<compile_context>
chip_gen: v6e
topology: v6e:2x2x1
jax: 0.10.0
libtpu: 0.0.40
codegen_flags: <defaults>
</compile_context>

<pallas_src>
import functools

import jax
import jax.numpy as jnp
from jax.experimental import pallas as pl
from jax.experimental.pallas import tpu as pltpu

BN_EPS = 1e-5
ALPHA_MIN = 1e-5
NEG_BIG = -1e30   # folded vocab-padding mask for the decoder bias


def _round_up(n, m):
    return ((n + m - 1) // m) * m


def _pad2(a, rows, cols, value=0.0):
    return jnp.pad(a, ((0, rows - a.shape[0]), (0, cols - a.shape[1])),
                   constant_values=value)


# ----------------------------------------------------------------------------
# Encoder: x -> alpha (Dirichlet concentration), t_emb = Dirichlet.mean @ Wt + bt
#   grid = (num_batch_tiles, num_v_tiles); V is the reduction axis (last).
# ----------------------------------------------------------------------------
def _encoder_kernel(k_true,
                    x_ref, w1_ref, b1_ref, w2_ref, b2_ref, wt_ref, bt_ref,
                    alpha_ref, temb_ref, h_acc):
    v = pl.program_id(1)

    @pl.when(v == 0)
    def _():
        h_acc[...] = jnp.zeros_like(h_acc)

    # Stream the first Linear over the vocab (reduction) axis: bf16 MXU, f32 acc.
    h_acc[...] += jnp.dot(x_ref[...], w1_ref[...],
                          preferred_element_type=jnp.float32)

    @pl.when(v == pl.num_programs(1) - 1)
    def _():
        h = jnp.maximum(h_acc[...] + b1_ref[...], 0.0)        # bias + ReLU (Dropout = id in eval)
        # Second Linear; BatchNorm1d(eval, affine=False) already folded into w2/b2.
        a = jnp.dot(h, w2_ref[...], preferred_element_type=jnp.float32) + b2_ref[...]
        # Numerically stable softplus.
        alpha = jnp.maximum(a, 0.0) + jnp.log1p(jnp.exp(-jnp.abs(a)))
        alpha = jnp.maximum(alpha, ALPHA_MIN)
        # Zero padded topic columns so the Dirichlet-mean normalizer is exact.
        k_idx = jax.lax.broadcasted_iota(jnp.int32, alpha.shape, 1)
        alpha = jnp.where(k_idx < k_true, alpha, 0.0)
        alpha_ref[...] = alpha
        # Dirichlet(alpha).mean  (eval path of the torch module)
        theta = alpha * pl.reciprocal(jnp.sum(alpha, axis=-1, keepdims=True),
                                      approx=False)
        temb = jnp.dot(theta, wt_ref[...], preferred_element_type=jnp.float32) + bt_ref[...]
        temb_ref[...] = temb.astype(temb_ref.dtype)            # bf16 for the decoder MXU


# ----------------------------------------------------------------------------
# Decoder: recon = LogSoftmax(t_emb @ Wv^T  [BN folded]) streamed over V tiles.
#   grid = (num_batch_tiles, 2, num_v_tiles)
#     phase 0: online row-max / sum-exp accumulation
#     phase 1: recompute the (cheap) recon tile and write  r - logsumexp
#   Padded vocab columns are handled by the -1e30 folded into bdec (no mask).
# ----------------------------------------------------------------------------
def _decoder_kernel(temb_ref, wvt_ref, bdec_ref,
                    recon_ref, m_acc, l_acc):
    p = pl.program_id(1)
    v = pl.program_id(2)

    # recon tile (b_tile, v_tile); decoder BN scale folded into wvt, shift in bdec.
    r = (jnp.dot(temb_ref[...], wvt_ref[...],
                 preferred_element_type=jnp.float32) + bdec_ref[...])

    @pl.when(jnp.logical_and(p == 0, v == 0))
    def _():
        m_acc[...] = jnp.full_like(m_acc, -jnp.inf)
        l_acc[...] = jnp.zeros_like(l_acc)

    @pl.when(p == 0)                                          # pass 1: online LSE stats
    def _():
        m_prev = m_acc[...]
        m_new = jnp.maximum(m_prev, jnp.max(r, axis=-1, keepdims=True))
        l_acc[...] = (l_acc[...] * jnp.exp(m_prev - m_new)
                      + jnp.sum(jnp.exp(r - m_new), axis=-1, keepdims=True))
        m_acc[...] = m_new

    @pl.when(p == 1)                                          # pass 2: write log-softmax
    def _():
        recon_ref[...] = r - (m_acc[...] + jnp.log(l_acc[...]))


# ----------------------------------------------------------------------------
# Parameter preparation (one-time): BN folding, padding, transpose, bf16 cast.
# ----------------------------------------------------------------------------
def prepare_params(w1, b1, w2, b2, wt, bt, vocab_embeddings,
                   bn_enc_mean=None, bn_enc_var=None,
                   bn_dec_mean=None, bn_dec_var=None,
                   *, v_tile=512):
    f32 = jnp.float32
    V, H = w1.shape
    K = w2.shape[1]
    E = wt.shape[1]

    if bn_enc_mean is None: bn_enc_mean = jnp.zeros((K,), f32)
    if bn_enc_var is None:  bn_enc_var = jnp.ones((K,), f32)
    if bn_dec_mean is None: bn_dec_mean = jnp.zeros((V,), f32)
    if bn_dec_var is None:  bn_dec_var = jnp.ones((V,), f32)

    # Fold BatchNorm1d(eval, affine=False) into the adjacent linear maps.
    inv_k = 1.0 / jnp.sqrt(bn_enc_var + BN_EPS)
    w2_f = w2 * inv_k[None, :]
    b2_f = (b2 - bn_enc_mean) * inv_k
    inv_v = 1.0 / jnp.sqrt(bn_dec_var + BN_EPS)
    wv_t = (vocab_embeddings * inv_v[:, None]).T              # (E, V), pre-transposed ONCE
    bdec = -bn_dec_mean * inv_v                               # per-vocab-column shift

    v_tile = _round_up(v_tile, 128)
    Hp = _round_up(H, 128)
    Kp = _round_up(K, 128)
    Ep = _round_up(E, 128)
    Vp = _round_up(V, v_tile)

    return dict(
        V=V, K=K, E=E, H=H, Vp=Vp, Hp=Hp, Kp=Kp, Ep=Ep, v_tile=v_tile,
        w1=_pad2(w1, Vp, Hp).astype(jnp.bfloat16),            # big: streamed, bf16
        b1=_pad2(b1.reshape(1, -1).astype(f32), 1, Hp),
        w2=_pad2(w2_f.astype(f32), Hp, Kp),
        b2=_pad2(b2_f.reshape(1, -1).astype(f32), 1, Kp),
        wt=_pad2(wt.astype(f32), Kp, Ep),
        bt=_pad2(bt.reshape(1, -1).astype(f32), 1, Ep),
        wv_t=_pad2(wv_t, Ep, Vp).astype(jnp.bfloat16),        # big: streamed, bf16
        # Padded vocab columns carry -1e30: the log-softmax mask is folded in here.
        bdec=_pad2(bdec.reshape(1, -1).astype(f32), 1, Vp, value=NEG_BIG),
    )


# ----------------------------------------------------------------------------
# Forward
# ----------------------------------------------------------------------------
def etm_dirichlet_forward(x, prep, *, b_tile=256):
    B, V = x.shape
    assert V == prep["V"], "vocab size mismatch"
    v_tile, Vp = prep["v_tile"], prep["Vp"]
    Hp, Kp, Ep = prep["Hp"], prep["Kp"], prep["Ep"]

    btile = _round_up(min(b_tile, B), 16)                     # 16: bf16 sublane packing
    Bp = _round_up(B, btile)
    nb, nv = Bp // btile, Vp // v_tile

    # Pad + cast once in the wrapper: kernel streams bf16 (half the x traffic).
    xp = _pad2(x.astype(jnp.float32), Bp, Vp).astype(jnp.bfloat16)

    # ---------------- encoder ----------------
    alpha_p, temb_p = pl.pallas_call(
        functools.partial(_encoder_kernel, prep["K"]),
        out_shape=(jax.ShapeDtypeStruct((Bp, Kp), jnp.float32),
                   jax.ShapeDtypeStruct((Bp, Ep), jnp.bfloat16)),
        grid_spec=pltpu.PrefetchScalarGridSpec(
            num_scalar_prefetch=0,
            grid=(nb, nv),
            in_specs=[
                pl.BlockSpec((btile, v_tile), lambda b, v: (b, v)),   # x (streamed over V)
                pl.BlockSpec((v_tile, Hp), lambda b, v: (v, 0)),      # W1 (streamed over V)
                pl.BlockSpec((1, Hp), lambda b, v: (0, 0)),           # b1 (resident)
                pl.BlockSpec((Hp, Kp), lambda b, v: (0, 0)),          # W2 (BN folded, resident)
                pl.BlockSpec((1, Kp), lambda b, v: (0, 0)),           # b2
                pl.BlockSpec((Kp, Ep), lambda b, v: (0, 0)),          # Wt
                pl.BlockSpec((1, Ep), lambda b, v: (0, 0)),           # bt
            ],
            out_specs=[
                pl.BlockSpec((btile, Kp), lambda b, v: (b, 0)),       # alpha
                pl.BlockSpec((btile, Ep), lambda b, v: (b, 0)),       # t_emb (bf16)
            ],
            scratch_shapes=[pltpu.VMEM((btile, Hp), jnp.float32)],    # h accumulator
        ),
        compiler_params=pltpu.CompilerParams(
            dimension_semantics=("parallel", "arbitrary")),
    )(xp, prep["w1"], prep["b1"], prep["w2"], prep["b2"], prep["wt"], prep["bt"])

    # ---------------- decoder (two-pass streaming log-softmax) ----------------
    recon_p = pl.pallas_call(
        _decoder_kernel,
        out_shape=jax.ShapeDtypeStruct((Bp, Vp), jnp.float32),
        grid_spec=pltpu.PrefetchScalarGridSpec(
            num_scalar_prefetch=0,
            grid=(nb, 2, nv),
            in_specs=[
                pl.BlockSpec((btile, Ep), lambda b, p, v: (b, 0)),    # t_emb (resident per b)
                pl.BlockSpec((Ep, v_tile), lambda b, p, v: (0, v)),   # Wv^T (streamed, BN folded)
                pl.BlockSpec((1, v_tile), lambda b, p, v: (0, v)),    # decoder BN shift (+mask)
            ],
            # phase 0 parks on block (b, 0) -> no garbage writebacks; phase 1 writes (b, v)
            out_specs=pl.BlockSpec((btile, v_tile), lambda b, p, v: (b, v * p)),
            scratch_shapes=[pltpu.VMEM((btile, 1), jnp.float32),      # running row max
                            pltpu.VMEM((btile, 1), jnp.float32)],     # running sum-exp
        ),
        compiler_params=pltpu.CompilerParams(
            dimension_semantics=("parallel", "arbitrary", "arbitrary")),
    )(temb_p, prep["wv_t"], prep["bdec"])

    return recon_p[:B, :V], alpha_p[:B, :prep["K"]]


# ----------------------------------------------------------------------------
# Pure-JAX reference (eval-mode semantics of the torch module, fresh BN stats)
# ----------------------------------------------------------------------------
def _reference(x, w1, b1, w2, b2, wt, bt, wv):
    h = jnp.maximum(x @ w1 + b1, 0.0)
    a = (h @ w2 + b2) / jnp.sqrt(1.0 + BN_EPS)
    alpha = jnp.maximum(jax.nn.softplus(a), ALPHA_MIN)
    theta = alpha / jnp.sum(alpha, axis=-1, keepdims=True)
    temb = theta @ wt + bt
    recon = (temb @ wv.T) / jnp.sqrt(1.0 + BN_EPS)
    return jax.nn.log_softmax(recon, axis=-1), alpha


if __name__ == "__main__":
    # Small, deliberately non-aligned shapes (exercise padding + multi-tile grid).
    B, V, E, K, H = 48, 600, 96, 20, 500

    key = jax.random.PRNGKey(0)
    kx, k1, k2, k3, k4, k5, k6, k7 = jax.random.split(key, 8)
    scale = 0.02
    x = jax.random.uniform(kx, (B, V), jnp.float32, 0.0, 3.0)      # bag-of-words counts
    w1 = scale * jax.random.normal(k1, (V, H), jnp.float32)
    b1 = scale * jax.random.normal(k2, (H,), jnp.float32)
    w2 = scale * jax.random.normal(k3, (H, K), jnp.float32)
    b2 = scale * jax.random.normal(k4, (K,), jnp.float32)
    wt = scale * jax.random.normal(k5, (K, E), jnp.float32)
    bt = scale * jax.random.normal(k6, (E,), jnp.float32)
    wv = scale * jax.random.normal(k7, (V, E), jnp.float32)        # vocab_embeddings

    prep = prepare_params(w1, b1, w2, b2, wt, bt, wv, v_tile=256)
    recon, alpha = etm_dirichlet_forward(x, prep, b_tile=16)
    jax.block_until_ready((recon, alpha))

    assert recon.shape == (B, V) and alpha.shape == (B, K)
    assert bool(jnp.all(jnp.isfinite(recon))) and bool(jnp.all(alpha >= ALPHA_MIN))
    # log-softmax rows must sum (in prob space) to ~1
    assert bool(jnp.allclose(jnp.sum(jnp.exp(recon), axis=1), 1.0, atol=1e-4))

    ref_recon, ref_alpha = _reference(x, w1, b1, w2, b2, wt, bt, wv)
    assert bool(jnp.allclose(alpha, ref_alpha, atol=3e-2, rtol=3e-2))
    assert bool(jnp.allclose(recon, ref_recon, atol=3e-2, rtol=3e-2))
    print("KERNEL_OK")
</pallas_src>

<mosaic_0001>
module attributes {stable_mosaic.version = 11 : i64} {
  func.func @_encoder_kernel(%arg0: i32, %arg1: i32, %arg2: memref<16x256xbf16, #tpu.memory_space<vmem>>, %arg3: memref<256x512xbf16, #tpu.memory_space<vmem>>, %arg4: memref<1x512xf32, #tpu.memory_space<vmem>>, %arg5: memref<512x128xf32, #tpu.memory_space<vmem>>, %arg6: memref<1x128xf32, #tpu.memory_space<vmem>>, %arg7: memref<128x128xf32, #tpu.memory_space<vmem>>, %arg8: memref<1x128xf32, #tpu.memory_space<vmem>>, %arg9: memref<16x128xf32, #tpu.memory_space<vmem>>, %arg10: memref<16x128xbf16, #tpu.memory_space<vmem>>, %arg11: memref<16x512xf32, #tpu.memory_space<vmem>>) attributes {dimension_semantics = [#tpu.dimension_semantics<parallel>, #tpu.dimension_semantics<arbitrary>], iteration_bounds = array<i64: 3, 3>, scalar_prefetch = 0 : i64, scratch_operands = 1 : i64, tpu.core_type = #tpu.core_type<tc>, window_params = [{transform_indices = @transform_0, window_bounds = array<i64: 16, 256>}, {transform_indices = @transform_1, window_bounds = array<i64: 256, 512>}, {pipeline_mode = #tpu.pipeline_mode<synchronous>, transform_indices = @transform_2, window_bounds = array<i64: 1, 512>}, {pipeline_mode = #tpu.pipeline_mode<synchronous>, transform_indices = @transform_3, window_bounds = array<i64: 512, 128>}, {pipeline_mode = #tpu.pipeline_mode<synchronous>, transform_indices = @transform_4, window_bounds = array<i64: 1, 128>}, {pipeline_mode = #tpu.pipeline_mode<synchronous>, transform_indices = @transform_5, window_bounds = array<i64: 128, 128>}, {pipeline_mode = #tpu.pipeline_mode<synchronous>, transform_indices = @transform_6, window_bounds = array<i64: 1, 128>}, {transform_indices = @transform_7, window_bounds = array<i64: 16, 128>}, {transform_indices = @transform_8, window_bounds = array<i64: 16, 128>}]} {
    %c0_i32 = arith.constant 0 : i32
    %0 = arith.cmpi eq, %arg1, %c0_i32 : i32
    %1 = arith.extui %0 : i1 to i32
    %c0_i32_0 = arith.constant 0 : i32
    %2 = arith.cmpi ne, %1, %c0_i32_0 : i32
    scf.if %2 {
      %cst_9 = arith.constant 0.000000e+00 : f32
      %12 = vector.broadcast %cst_9 : f32 to vector<16x512xf32>
      %c0_10 = arith.constant 0 : index
      %c0_11 = arith.constant 0 : index
      %13 = vector.load %arg11[%c0_10, %c0_11] : memref<16x512xf32, #tpu.memory_space<vmem>>, vector<16x512xf32>
      tpu.vector_store %arg11[%c0_10, %c0_11], %12 {strides = array<i32>} : memref<16x512xf32, #tpu.memory_space<vmem>>, vector<16x512xf32>,
    } else {
    }
    %c0 = arith.constant 0 : index
    %c0_1 = arith.constant 0 : index
    %3 = vector.load %arg11[%c0, %c0_1] : memref<16x512xf32, #tpu.memory_space<vmem>>, vector<16x512xf32>
    %c0_2 = arith.constant 0 : index
    %c0_3 = arith.constant 0 : index
    %4 = vector.load %arg2[%c0_2, %c0_3] : memref<16x256xbf16, #tpu.memory_space<vmem>>, vector<16x256xbf16>
    %c0_4 = arith.constant 0 : index
    %c0_5 = arith.constant 0 : index
    %5 = vector.load %arg3[%c0_4, %c0_5] : memref<256x512xbf16, #tpu.memory_space<vmem>>, vector<256x512xbf16>
    %cst = arith.constant dense<0.000000e+00> : vector<16x512xf32>
    %6 = tpu.matmul %4, %5, %cst {dimension_numbers = #tpu.dot_dimension_numbers<[1], [0], [0], [1], [0, 0, 1, 1], [], []>} : vector<16x256xbf16>, vector<256x512xbf16>, vector<16x512xf32> -> vector<16x512xf32>
    %7 = arith.addf %3, %6 : vector<16x512xf32>
    %c0_6 = arith.constant 0 : index
    %c0_7 = arith.constant 0 : index
    %8 = vector.load %arg11[%c0_6, %c0_7] : memref<16x512xf32, #tpu.memory_space<vmem>>, vector<16x512xf32>
    tpu.vector_store %arg11[%c0_6, %c0_7], %7 {strides = array<i32>} : memref<16x512xf32, #tpu.memory_space<vmem>>, vector<16x512xf32>,
    %c2_i32 = arith.constant 2 : i32
    %9 = arith.cmpi eq, %arg1, %c2_i32 : i32
    %10 = arith.extui %9 : i1 to i32
    %c0_i32_8 = arith.constant 0 : i32
    %11 = arith.cmpi ne, %10, %c0_i32_8 : i32
    scf.if %11 {
      %c0_9 = arith.constant 0 : index
      %c0_10 = arith.constant 0 : index
      %12 = vector.load %arg11[%c0_9, %c0_10] : memref<16x512xf32, #tpu.memory_space<vmem>>, vector<16x512xf32>
      %c0_11 = arith.constant 0 : index
      %c0_12 = arith.constant 0 : index
      %13 = vector.load %arg4[%c0_11, %c0_12] : memref<1x512xf32, #tpu.memory_space<vmem>>, vector<1x512xf32>
      %14 = vector.broadcast %13 : vector<1x512xf32> to vector<16x512xf32>
      %15 = arith.addf %12, %14 : vector<16x512xf32>
      %cst_13 = arith.constant 0.000000e+00 : f32
      %16 = vector.broadcast %cst_13 : f32 to vector<16x512xf32>
      %17 = arith.maximumf %15, %16 : vector<16x512xf32>
      %c0_14 = arith.constant 0 : index
      %c0_15 = arith.constant 0 : index
      %18 = vector.load %arg5[%c0_14, %c0_15] : memref<512x128xf32, #tpu.memory_space<vmem>>, vector<512x128xf32>
      %cst_16 = arith.constant dense<0.000000e+00> : vector<16x128xf32>
      %19 = tpu.matmul %17, %18, %cst_16 {dimension_numbers = #tpu.dot_dimension_numbers<[1], [0], [0], [1], [0, 0, 1, 1], [], []>} : vector<16x512xf32>, vector<512x128xf32>, vector<16x128xf32> -> vector<16x128xf32>
      %c0_17 = arith.constant 0 : index
      %c0_18 = arith.constant 0 : index
      %20 = vector.load %arg6[%c0_17, %c0_18] : memref<1x128xf32, #tpu.memory_space<vmem>>, vector<1x128xf32>
      %21 = vector.broadcast %20 : vector<1x128xf32> to vector<16x128xf32>
      %22 = arith.addf %19, %21 : vector<16x128xf32>
      %cst_19 = arith.constant 0.000000e+00 : f32
      %23 = vector.broadcast %cst_19 : f32 to vector<16x128xf32>
      %24 = arith.maximumf %22, %23 : vector<16x128xf32>
      %25 = math.absf %22 : vector<16x128xf32>
      %cst_20 = arith.constant 0.000000e+00 : f32
      %26 = vector.broadcast %cst_20 : f32 to vector<16x128xf32>
      %27 = arith.subf %26, %25 : vector<16x128xf32>
      %28 = math.exp %27 : vector<16x128xf32>
      %29 = math.log1p %28 : vector<16x128xf32>
      %30 = arith.addf %24, %29 : vector<16x128xf32>
      %cst_21 = arith.constant 9.99999974E-6 : f32
      %31 = vector.broadcast %cst_21 : f32 to vector<16x128xf32>
      %32 = arith.maximumf %30, %31 : vector<16x128xf32>
      %33 = tpu.iota {dimensions = array<i32: 1>} : vector<16x128xi32>
      %c20_i32 = arith.constant 20 : i32
      %34 = vector.broadcast %c20_i32 : i32 to vector<16x128xi32>
      %35 = arith.cmpi slt, %33, %34 : vector<16x128xi32>
      %cst_22 = arith.constant 0.000000e+00 : f32
      %36 = vector.broadcast %cst_22 : f32 to vector<16x128xf32>
      %37 = arith.select %35, %32, %36 : vector<16x128xi1>, vector<16x128xf32>
      %c0_23 = arith.constant 0 : index
      %c0_24 = arith.constant 0 : index
      %38 = vector.load %arg9[%c0_23, %c0_24] : memref<16x128xf32, #tpu.memory_space<vmem>>, vector<16x128xf32>
      tpu.vector_store %arg9[%c0_23, %c0_24], %37 {strides = array<i32>} : memref<16x128xf32, #tpu.memory_space<vmem>>, vector<16x128xf32>,
      %cst_25 = arith.constant dense<0.000000e+00> : vector<16xf32>
      %39 = vector.multi_reduction <add>, %37, %cst_25 [1] : vector<16x128xf32> to vector<16xf32>
      %40 = vector.shape_cast %39 : vector<16xf32> to vector<16x1xf32>
      %41 = tpu.reciprocal %40 : vector<16x1xf32> -> vector<16x1xf32>
      %42 = vector.broadcast %41 : vector<16x1xf32> to vector<16x128xf32>
      %43 = arith.mulf %37, %42 : vector<16x128xf32>
      %c0_26 = arith.constant 0 : index
      %c0_27 = arith.constant 0 : index
      %44 = vector.load %arg7[%c0_26, %c0_27] : memref<128x128xf32, #tpu.memory_space<vmem>>, vector<128x128xf32>
      %cst_28 = arith.constant dense<0.000000e+00> : vector<16x128xf32>
      %45 = tpu.matmul %43, %44, %cst_28 {dimension_numbers = #tpu.dot_dimension_numbers<[1], [0], [0], [1], [0, 0, 1, 1], [], []>} : vector<16x128xf32>, vector<128x128xf32>, vector<16x128xf32> -> vector<16x128xf32>
      %c0_29 = arith.constant 0 : index
      %c0_30 = arith.constant 0 : index
      %46 = vector.load %arg8[%c0_29, %c0_30] : memref<1x128xf32, #tpu.memory_space<vmem>>, vector<1x128xf32>
      %47 = vector.broadcast %46 : vector<1x128xf32> to vector<16x128xf32>
      %48 = arith.addf %45, %47 : vector<16x128xf32>
      %49 = arith.truncf %48 : vector<16x128xf32> to vector<16x128xbf16>
      %c0_31 = arith.constant 0 : index
      %c0_32 = arith.constant 0 : index
      %50 = vector.load %arg10[%c0_31, %c0_32] : memref<16x128xbf16, #tpu.memory_space<vmem>>, vector<16x128xbf16>
      tpu.vector_store %arg10[%c0_31, %c0_32], %49 {strides = array<i32>} : memref<16x128xbf16, #tpu.memory_space<vmem>>, vector<16x128xbf16>,
    } else {
    }
    return
  }
  func.func @transform_0(%arg0: i32, %arg1: i32) -> (i32, i32) {
    %c0_i32 = arith.constant 0 : i32
    return %arg0, %arg1 : i32, i32
  }
  func.func @transform_1(%arg0: i32, %arg1: i32) -> (i32, i32) {
    %c0_i32 = arith.constant 0 : i32
    %c0_i32_0 = arith.constant 0 : i32
    return %arg1, %c0_i32 : i32, i32
  }
  func.func @transform_2(%arg0: i32, %arg1: i32) -> (i32, i32) {
    %c0_i32 = arith.constant 0 : i32
    %c0_i32_0 = arith.constant 0 : i32
    %c0_i32_1 = arith.constant 0 : i32
    return %c0_i32, %c0_i32_0 : i32, i32
  }
  func.func @transform_3(%arg0: i32, %arg1: i32) -> (i32, i32) {
    %c0_i32 = arith.constant 0 : i32
    %c0_i32_0 = arith.constant 0 : i32
    %c0_i32_1 = arith.constant 0 : i32
    return %c0_i32, %c0_i32_0 : i32, i32
  }
  func.func @transform_4(%arg0: i32, %arg1: i32) -> (i32, i32) {
    %c0_i32 = arith.constant 0 : i32
    %c0_i32_0 = arith.constant 0 : i32
    %c0_i32_1 = arith.constant 0 : i32
    return %c0_i32, %c0_i32_0 : i32, i32
  }
  func.func @transform_5(%arg0: i32, %arg1: i32) -> (i32, i32) {
    %c0_i32 = arith.constant 0 : i32
    %c0_i32_0 = arith.constant 0 : i32
    %c0_i32_1 = arith.constant 0 : i32
    return %c0_i32, %c0_i32_0 : i32, i32
  }
  func.func @transform_6(%arg0: i32, %arg1: i32) -> (i32, i32) {
    %c0_i32 = arith.constant 0 : i32
    %c0_i32_0 = arith.constant 0 : i32
    %c0_i32_1 = arith.constant 0 : i32
    return %c0_i32, %c0_i32_0 : i32, i32
  }
  func.func @transform_7(%arg0: i32, %arg1: i32) -> (i32, i32) {
    %c0_i32 = arith.constant 0 : i32
    %c0_i32_0 = arith.constant 0 : i32
    return %arg0, %c0_i32 : i32, i32
  }
  func.func @transform_8(%arg0: i32, %arg1: i32) -> (i32, i32) {
    %c0_i32 = arith.constant 0 : i32
    %c0_i32_0 = arith.constant 0 : i32
    return %arg0, %c0_i32 : i32, i32
  }
}

</mosaic_0001>

<bundles_post_ra>
// kernel: tpu_custom_call.1
= control target key start
LH: loop header
LB: loop body
LE: loop exit
PB: predicated region body
PF: predicated region fallthrough
CT: control target
= control target key end

     0   :  { %s2962_s0 = inlined_call_operand.hbm [shape: bf16[48,768], index: 0, kind: input, shape index: {}]   ;;  %s2963_s1 = inlined_call_operand.hbm [shape: bf16[768,512], index: 1, kind: input, shape index: {}]   ;;  %s2964_s2 = inlined_call_operand.hbm [shape: f32[1,512], index: 2, kind: input, shape index: {}]   ;;  %s2965_s3 = inlined_call_operand.hbm [shape: f32[512,128], index: 3, kind: input, shape index: {}]   ;;  %s2966_s4 = inlined_call_operand.vmem [shape: f32[1,128], index: 4, kind: input, shape index: {}]   ;;  %s2967_s5 = inlined_call_operand.hbm [shape: f32[128,128], index: 5, kind: input, shape index: {}]   ;;  %s2968_s6 = inlined_call_operand.vmem [shape: f32[1,128], index: 6, kind: input, shape index: {}]   ;;  %s2969_s7 = inlined_call_operand.hbm [shape: f32[48,128], index: 7, kind: output, shape index: {0}]   ;;  %s2970_s8 = inlined_call_operand.hbm [shape: bf16[48,128], index: 8, kind: output, shape index: {1}]  }
   0x1   :  { %2989 = sst [smem:[#allocation31_spill]] %s2962_s0 }
   0x2   :  { %2990 = sst [smem:[#allocation32_spill]] %s2964_s2 }
   0x3   :  { %2991 = sst [smem:[#allocation33_spill]] %s2965_s3 }
   0x4   :  { %2992 = sst [smem:[#allocation34_spill]] %s2966_s4 }
   0x5   :  { %2993 = sst [smem:[#allocation35_spill]] %s2967_s5 }
   0x6   :  { %2994 = sst [smem:[#allocation36_spill]] %s2968_s6 }
   0x7   :  { %2995 = sst [smem:[#allocation37_spill]] %s2969_s7 }
   0x8   :  { %2996 = sst [smem:[#allocation38_spill]] %s2970_s8 }
   0x9   :  { %14 = vsyncpa [#allocation4], 0 }
   0xa   :  { %16 = vsyncpa [#allocation4 + $0x1], 0 }
   0xb   :  { %17 = vsyncpa [#allocation7], 0 }
   0xc   :  { %19 = vsyncpa [#allocation7 + $0x1], 0 }
   0xd   :  { %20 = vsyncpa [#allocation10], 0 }
   0xe   :  { %21 = vsyncpa [#allocation5], 0 }
   0xf   :  { %23 = vsyncpa [#allocation5 + $0x1], 0 }
  0x10   :  { %24 = vsyncpa [#allocation14], 0 }
  0x11   :  { %26 = vsyncpa [#allocation14 + $0x1], 0  ;;  %s2505_s27 = smov 0   ;;  %s2507_s28 = smov 0  }
  0x12   :  { %s2509_s29 = smov 0   ;;  %s2511_s30 = smov 0  }
  0x13   :  { %s2513_s9 = smov 0   ;;  %s2515_s10 = smov 0  }
  0x14   :  { %s2517_s11 = smov 0   ;;  %s2519_s12 = smov 0  }
  0x15   :  { %s2521_s13 = smov 0   ;;  %s2523_s14 = smov 0  }
  0x16   :  { %s2525_s15 = smov 0   ;;  %s2527_s16 = smov 0  }
  0x17   :  { %s2529_s17 = smov 0   ;;  %s2531_s18 = smov 0  }
  0x18 LB: > { %2997 = sst [smem:[#allocation21_spill]] %s2389_s27  ;;  %s2572_s19 = sadd.s32 4294967295, %s2441_s18   ;;  %s2441_s18 = sphi %s2531_s18, %s32_s18   ;;  %s2437_s17 = sphi %s2529_s17, %s3050_s17   ;;  %s2433_s16 = sphi %s2527_s16, %s3061_s16   ;;  %s2429_s15 = sphi %s2525_s15, %s3048_s15   ;;  %s2425_s14 = sphi %s2523_s14, %s3060_s14   ;;  %s2421_s13 = sphi %s2521_s13, %s3059_s13   ;;  %s2417_s12 = sphi %s2519_s12, %s3058_s12   ;;  %s2413_s11 = sphi %s2517_s11, %s3057_s11   ;;  %s2409_s10 = sphi %s2515_s10, %s3056_s10   ;;  %s2405_s9 = sphi %s2513_s9, %s3055_s9   ;;  %s2401_s30 = sphi %s2511_s30, %s3054_s30   ;;  %s2397_s29 = sphi %s2509_s29, %s3053_s29   ;;  %s2393_s28 = sphi %s2507_s28, %s3052_s28   ;;  %s2389_s27 = sphi %s2505_s27, %s3051_s27  }
  0x19   : > { %2998 = sst [smem:[#allocation22_spill]] %s2393_s28  ;;  %s1589_s20 = sadd.s32 4294967294, %s2441_s18  }
  0x1a   : > { %2999 = sst [smem:[#allocation23_spill]] %s2425_s14  ;;  %p66_p0 = scmp.ne.s32.totalorder %s2417_s12, %s2413_s11 }
  0x1b   : > { %3000 = sst [smem:[#allocation24_spill]] %s2429_s15  ;;  %p2975_p1 = scmp.eq.s32.totalorder %s2572_s19, 0 }
  0x1c   : > { %3001 = sst [smem:[#allocation25_spill]] %s2437_s17  ;;  %p92_p2 = scmp.ne.s32.totalorder %s2405_s9, %s2401_s30 }
  0x1d   : > { %p2581_p3 = por %p2975_p1, %p66_p0  ;;  %p220_p4 = scmp.ne.s32.totalorder %s2397_s29, %s2393_s28 }
  0x1e   : > { %p2589_p5 = por %p92_p2, %p2975_p1  ;;  %p221_p6 = scmp.eq.s32.totalorder %s2572_s19, 8 }
  0x1f   : > { %s3002_s22 = scalar_select %p2581_p3, 1, 0 }
  0x20   : > { %s3003_s23 = scalar_select %p2589_p5, 1, 0 }
  0x21   : > { %p226_p7 = scmp.ne.s32.totalorder %s2393_s28, %s2389_s27  ;;  %p227_p8 = scmp.eq.s32.totalorder %s1589_s20, 8 }
  0x22   : > { %p2596_p9 = por %p221_p6, %p220_p4  ;;  %p1590_p10 = scmp.ge.s32.totalorder %s2441_s18, 1 }
  0x23   : > { %p2601_p11 = por %p227_p8, %p226_p7  ;;  %p260_p12 = scmp.lt.s32.totalorder %s2441_s18, 10 }
  0x24   : > { %s3004_s24 = scalar_select %p2596_p9, 1, 0 }
  0x25   : > { %s3006_s25 = scalar_select %p2601_p11, 1, 0 }
  0x26   : > { %3005 = sst [smem:[#allocation26_spill]] %s3004_s24  ;;  %p2606_p13 = pnand %p1590_p10, %p260_p12 }
  0x27   : > { %3007 = sst [smem:[#allocation27_spill]] %s3006_s25  ;;  %s2443_s30 = smov [#allocation8]  }
  0x28   : > { %s3008_s26 = scalar_select %p2606_p13, 1, 0 }
  0x29   : > { %s273_s11 = sshll.u32 %s2443_s30, 4  ;;  %p1853_p0 = pneg %p2606_p13  ;;  %s274_s11 = int_to_ptr.vmem [resolvable:$true] %s273_s11 }
  0x2a   : > { %s2444_s20 = smov [#allocation9]   ;;  %s2445_s25 = smov [#allocation11]  }
  0x2b   : > { %s283_s21 = sshll.u32 %s2444_s20, 4  ;;  %p2614_p2 = pnand %p1853_p0, %p2975_p1  ;;  %s284_s21 = int_to_ptr.vmem [resolvable:$true] %s283_s21 }
  0x2c   : > { %s299_s8 = sshll.u32 %s2445_s25, 4  ;;  %s2132_s7 = scalar_lea.vmem %s274_s11, 64  ;;  %s300_s8 = int_to_ptr.vmem [resolvable:$true] %s299_s8 }
  0x2d   : > { %p2123_p4 = pneg %p2614_p2  ;;  %p2133_p6 = scmp.ne.s32.totalorder %s274_s11, %s2132_s7 }
  0x2e   : > { %p2140_p10 = scmp.lt.s32.totalorder %s274_s11, %s274_s11  ;;  %p2141_p12 = scmp.lt.s32.totalorder %s2132_s7, %s2132_s7 }
  0x2f   : > { %p2135_p7 = pnand %p2133_p6, %p2123_p4 }
  0x30   : > { %p2142_p11 = por %p2141_p12, %p2140_p10 }
  0x31   : > { %p2136_p8 = pneg %p2135_p7 }
  0x33   : > { %p2143_p0 = pnand %p2142_p11, %p2136_p8 }
  0x35   : > { %2146 = shalt.err (!%p2143_p0)
}
  0x36   : > { %s3010_s2 = sld [smem:[#allocation32_spill]]  ;;  %s2158_s25 = scalar_lea.vmem %s284_s21, 8192 }
  0x37   : > { %p2159_p1 = scmp.ne.s32.totalorder %s284_s21, %s2158_s25  ;;  %p2166_p6 = scmp.lt.s32.totalorder %s284_s21, %s284_s21 }
  0x38   : > { %p2167_p7 = scmp.lt.s32.totalorder %s2158_s25, %s2158_s25 }
  0x39   : > { %p2161_p9 = pnand %p2159_p1, %p2123_p4 }
  0x3a   : > { %p2168_p3 = por %p2167_p7, %p2166_p6 }
  0x3b   : > { %p2162_p5 = pneg %p2161_p9 }
  0x3c   : > { %1856 = dma.hbm_to_vmem [thread:$0]  (!%p2614_p2), %s3010_s2, 64, %s274_s11, [#allocation7]  }
  0x3d   : > { %p2169_p13 = pnand %p2168_p3, %p2162_p5 }
  0x3f   : > { %2172 = shalt.err (!%p2169_p13)
}
  0x40   : > { %s2982_s7 = smov 128   ;;  %s2983_s24 = smov 8  }
  0x41   : > { %s3011_s3 = sld [smem:[#allocation33_spill]]  ;;  %s2184_s20 = scalar_lea.vmem %s300_s8, 2048 }
  0x42   : > { %p2185_p1 = scmp.ne.s32.totalorder %s300_s8, %s2184_s20  ;;  %p2192_p5 = scmp.lt.s32.totalorder %s300_s8, %s300_s8 }
  0x43   : > { %p2193_p11 = scmp.lt.s32.totalorder %s2184_s20, %s2184_s20 }
  0x44   : > { %p2187_p9 = pnand %p2185_p1, %p2123_p4 }
  0x45   : > { %p2194_p13 = por %p2193_p11, %p2192_p5 }
  0x46   : > { %p2188_p3 = pneg %p2187_p9 }
  0x47   : > { %1859 = dma.hbm_to_vmem [thread:$0]  (!%p2614_p2), %s3011_s3, 8192, %s284_s21, [#allocation10], %s2982_s7, %s2982_s7, %s2983_s24  }
  0x48   : > { %p2195_p8 = pnand %p2194_p13, %p2188_p3 }
  0x4a   : > { %2198 = shalt.err (!%p2195_p8)
}
  0x4b   : > { %s3012_s5 = sld [smem:[#allocation35_spill]]  ;;  %s41_s27 = sadd.s32 1, %s2433_s16 }
  0x4c   : > { %p42_p4 = scmp.ge.s32.totalorder %s41_s27, 3  ;;  %s44_s21 = sadd.s32 1, %s2437_s17 }
  0x4d   : > { %s53_s30 = sadd.s32 1, %s2421_s13  ;;  %p60_p10 = scmp.ne.s32.totalorder %s2421_s13, %s2417_s12 }
  0x4e   : > { %s3063_s27 = smov (%p42_p4, %s41_s27), 0  ;;  %s3065_s21 = smov (!%p42_p4, %s44_s21), %s2437_s17 }
  0x4f   : > { %3013 = sst [smem:[#allocation28_spill]] %s3063_s27  ;;  %s2660_s20 = ssub.s32 %s2433_s16, %s3063_s27 }
  0x50   : > { %p46_p12 = scmp.ge.s32.totalorder %s3065_s21, 3  ;;  %p77_p0 = scmp.eq.s32.totalorder %s2660_s20, 0 }
  0x51   : > { %1862 = dma.hbm_to_vmem [thread:$0]  (!%p2614_p2), %s3012_s5, 2048, %s300_s8, [#allocation10], %s2982_s7, %s2982_s7, %s2983_s24  }
  0x52   : > { %p61_p2 = scmp.eq.s32.totalorder %s2441_s18, 0  ;;  %p1880_p7 = scmp.lt.s32.totalorder %s2441_s18, 9 }
  0x53   : > { %s3067_s21 = smov (%p46_p12, %s3065_s21), 0  ;;  %s316_s25 = sand.u32 1, %s2421_s13  }
  0x54   : > { %p2666_p6 = por %p61_p2, %p60_p10  ;;  %3015 = sst [smem:[#allocation29_spill]] %s3067_s21 }
  0x55   : > { %s1597_s11 = sshll.u32 %s2433_s16, 1  ;;  %s48_s7 = ssub.s32 %s2437_s17, %s3067_s21 }
  0x56   : > { %s50_s24 = sor.u32 %s2660_s20, %s48_s7  ;;  %p208_p1 = scmp.eq.s32.totalorder %s48_s7, 0 }
  0x57   : > { %p51_p9 = scmp.eq.s32.totalorder %s50_s24, 0  ;;  %s1595_s2 = sshll.u32 %s316_s25, 4 }
  0x58   : > { %s3016_s3 = sadd.s32 1, %s2397_s29  ;;  %s1832_s15 = smul.u32 12, %s2437_s17 }
  0x59   : > { %s2681_s5 = scalar_select %p208_p1, %s2397_s29, %s3016_s3  }
  0x5a   : > { %s2684_s27 = scalar_select %p51_p9, %s2421_s13, %s53_s30  }
  0x5b   : > { %3017 = sst [smem:[#allocation30_spill]] %s2681_s5  ;;  %s320_s6 = scalar_lea.vmem [#allocation3], %s1595_s2 }
  0x5c   : > { %s330_s4 = sshll.u32 %s320_s6, 4  ;;  %p2691_p3 = pnand %p1880_p7, %p2666_p6  ;;  %s331_s4 = int_to_ptr.vmem [resolvable:$true] %s330_s4 }
  0x5d   : > { %s327_s21 = sadd.s32 %s1832_s15, %s1597_s11  ;;  %s3019_s0 = sld [smem:[#allocation31_spill]] }
  0x5e   : > { %s1599_s7 = sshll.u32 %s327_s21, 6  ;;  %s317_s5 = scalar_lea.sflag [#allocation4], %s316_s25 }
  0x5f   : > { %p2201_p5 = pneg %p2691_p3  ;;  %s2212_s30 = scalar_lea.vmem %s331_s4, 256 }
  0x60   : > { %p2213_p11 = scmp.ne.s32.totalorder %s331_s4, %s2212_s30  ;;  %s2448_s2 = smov [#allocation3]  }
  0x61   : > { %s2217_s6 = sshll.u32 %s2448_s2, 4  ;;  %s2218_s6 = int_to_ptr.vmem [resolvable:$false] %s2217_s6 }
  0x62   : > { %p2215_p13 = pnand %p2213_p11, %p2201_p5  ;;  %s2219_s8 = scalar_lea.vmem %s2218_s6, 512 }
  0x63   : > { %s329_s3 = scalar_lea.hbm %s3019_s0, %s1599_s7  ;;  %p2220_p4 = scmp.lt.s32.totalorder %s331_s4, %s2218_s6 }
  0x64   : > { %p2216_p8 = pneg %p2215_p13  ;;  %p2221_p10 = scmp.lt.s32.totalorder %s2219_s8, %s2212_s30 }
  0x66   : > { %p2222_p12 = por %p2221_p10, %p2220_p4 }
  0x68   : > { %p2223_p6 = pnand %p2222_p12, %p2216_p8 }
  0x6a   : > { %2226 = shalt.err (!%p2223_p6)
}
  0x6b   : > { %s2449_s15 = smov 384   ;;  %s3020_s28 = smov 8  }
  0x6c   : > { %s3021_s21 = smov 128   ;;  %s340_s25 = sand.u32 1, %s2441_s18  }
  0x6d   : > { %1866 = dma.hbm_to_vmem [thread:$0]  (!%p2691_p3), %s329_s3, 256, %s331_s4, %s317_s5, %s2449_s15, %s3021_s21, %s3020_s28  }
  0x6e   : > { %s79_s11 = sadd.s32 1, %s2409_s10  ;;  %p86_p1 = scmp.ne.s32.totalorder %s2409_s10, %s2405_s9 }
  0x6f   : > { %s2711_s7 = scalar_select %p77_p0, %s2409_s10, %s79_s11  }
  0x70   : > { %p88_p9 = por %p86_p1, %p61_p2  ;;  %s342_s14 = sand.u32 1, %s2409_s10  }
  0x71   : > { %s1600_s24 = sshll.u32 %s342_s14, 9  ;;  %s1693_s30 = sshll.u32 %s2433_s16, 13 }
  0x72   : > { %s351_s8 = scalar_lea.hbm %s2963_s1, %s1693_s30  ;;  %s344_s0 = scalar_lea.vmem [#allocation6], %s1600_s24 }
  0x73   : > { %s352_s17 = sshll.u32 %s344_s0, 4  ;;  %p2722_p5 = pnand %p1880_p7, %p88_p9  ;;  %s353_s17 = int_to_ptr.vmem [resolvable:$true] %s352_s17 }
  0x74   : > { %s341_s5 = scalar_lea.sflag [#allocation7], %s340_s25  ;;  %s2240_s20 = scalar_lea.vmem %s353_s17, 8192 }
  0x75   : > { %p2229_p0 = pneg %p2722_p5  ;;  %p2241_p2 = scmp.ne.s32.totalorder %s353_s17, %s2240_s20 }
  0x76   : > { %s2450_s3 = smov [#allocation6]  }
  0x77   : > { %p2243_p3 = pnand %p2241_p2, %p2229_p0  ;;  %s2245_s15 = sshll.u32 %s2450_s3, 4  ;;  %s2246_s15 = int_to_ptr.vmem [resolvable:$false] %s2245_s15 }
  0x78   : > { %s2247_s28 = scalar_lea.vmem %s2246_s15, 16384  ;;  %p2248_p13 = scmp.lt.s32.totalorder %s353_s17, %s2246_s15 }
  0x79   : > { %p2244_p11 = pneg %p2243_p3  ;;  %p2249_p8 = scmp.lt.s32.totalorder %s2247_s28, %s2240_s20 }
  0x7b   : > { %p2250_p4 = por %p2249_p8, %p2248_p13 }
  0x7d   : > { %p2251_p7 = pnand %p2250_p4, %p2244_p11 }
  0x7f   : > { %2254 = shalt.err (!%p2251_p7)
}
  0x80   : > { %s2451_s0 = smov 256   ;;  %s2452_s21 = smov 16  }
  0x81   : > { %1869 = dma.hbm_to_vmem [thread:$0]  (!%p2722_p5), %s351_s8, 8192, %s353_s17, %s341_s5, %s2451_s0, %s2451_s0, %s2452_s21  }
  0x82   : > { %p3023_p10 = scmp.ne.s32.totalorder %s3008_s26, 0 }
  0x83   : > { %s366_s25 = sand.u32 (!%p3023_p10), 1, %s2417_s12   ;;  %p3024_p12 = scmp.ne.s32.totalorder (!%p3023_p10), %s3002_s22, 0 }
  0x84   : > { %364 = sbr.rel (%p3023_p10) target bundleno = 1128 (0x468), region = 48  ;;  %s2733_s11 = sshll.u32 (!%p3023_p10), %s366_s25, 4 }
  0x85   : > { %s367_s14 = scalar_lea.sflag (!%p3023_p10), [#allocation4], %s366_s25  ;;  %s370_s24 = scalar_lea.vmem (!%p3023_p10), [#allocation3], %s2733_s11 }
  0x89   : > { %2364 = dma.done.wait (%p3024_p12), %s367_s14, 256  }
  0x8a   : > { %2366 = vsyncadd (%p3024_p12), %s367_s14, 4294967040  ;;  %s375_s17 = sand.u32 1, %s2572_s19   ;;  %s377_s30 = sand.u32 1, %s2405_s9  }
  0x8b   : > { %s1606_s26 = sshll.u32 %s377_s30, 9  ;;  %s376_s2 = scalar_lea.sflag [#allocation7], %s375_s17 }
  0x8c   : > { %s2742_s6 = scalar_lea.vmem [#allocation6], %s1606_s26  ;;  %p3025_p6 = scmp.ne.s32.totalorder %s3003_s23, 0 }
  0x8e   : > { %2368 = dma.done.wait (%p3025_p6), %s376_s2, 8192  }
  0x8f   : > { %2370 = vsyncadd (%p3025_p6), %s376_s2, 4294959104  ;;  %p3026_p1 = scmp.eq.s32.totalorder %s2572_s19, 0 }
  0x91   : > { %2372 = dma.done.wait (%p3026_p1), [#allocation7], 64   ;;  %p3027_p9 = pmov %p3026_p1 }
  0x92   : > { %p3028_p5 = pmov %p3026_p1 }
  0x93   : > { %2374 = vsyncadd (%p3027_p9), [#allocation7], 4294967232 }
  0x94   : > { %2376 = dma.done.wait (%p3028_p5), [#allocation10], 10240   ;;  %p3029_p0 = pmov %p3026_p1 }
  0x95   : > { %s3030_s22 = sld [smem:[#allocation22_spill]] }
  0x96   : > { %2378 = vsyncadd (%p3029_p0), [#allocation10], 4294957056  ;;  %s3031_s3 = sld [smem:[#allocation23_spill]] }
  0x9b   : > { %s2757_s8 = sand.u32 1, %s3030_s22  }
  0x9c   : > { %s1610_s4 = sshll.u32 %s2757_s8, 4  ;;  %s1611_s23 = sshll.u32 %s2757_s8, 3 }
  0x9d   : > { %s2761_s5 = scalar_lea.vmem [#allocation12], %s1610_s4  ;;  %s2763_s20 = scalar_lea.vmem [#allocation13], %s1611_s23 }
  0x9e   : > { %p1612_p2 = scmp.ne.s32.totalorder %s3031_s3, 0 }
  0xa0   : > { %442 = sbr.rel (%p1612_p2) target bundleno = 170 (0xaa), region = 72 }
  0xa5   : > { %v2453_v0 = vmov 0.0  }
  0xa6   : > { %443 = vst [vmem:[#allocation2 + $0x30] sm:$0xff] %v2453_v0  ;;  %444 = vst [vmem:[#allocation2] sm:$0xff] %v2453_v0 }
  0xa7   : > { %445 = vst [vmem:[#allocation2 + $0x18] sm:$0xff] %v2453_v0  ;;  %446 = vst [vmem:[#allocation2 + $0x10] sm:$0xff] %v2453_v0 }
  0xa8   : > { %447 = vst [vmem:[#allocation2 + $0x8] sm:$0xff] %v2453_v0  ;;  %448 = vst [vmem:[#allocation2 + $0x20] sm:$0xff] %v2453_v0 }
  0xa9   : > { %449 = vst [vmem:[#allocation2 + $0x28] sm:$0xff] %v2453_v0  ;;  %450 = vst [vmem:[#allocation2 + $0x38] sm:$0xff] %v2453_v0 }
  0xaa PF: > { %v2010_v1 = vld [vmem:[%s2742_s6 + $0xe4] ss:$16 sps:$4 sm:$0xff]   ;;  %v2012_v2 = vld [vmem:[%s2742_s6 + $0xec] ss:$16 sps:$4 sm:$0xff]   ;;  %v2014_v3 = vld [vmem:[%s2742_s6 + $0xe0] ss:$16 sps:$4 sm:$0xff]  }
  0xab   : > { %855 = vmatprep.subr.bf16.mxu0 %v2010_v1  ;;  %v2015_v4 = vld [vmem:[%s2742_s6 + $0xe8] ss:$16 sps:$4 sm:$0xff]   ;;  %898 = vmatprep.subr.bf16.mxu1 %v2012_v2  ;;  %v2016_v5 = vld [vmem:[%s2742_s6 + $0xc4] ss:$16 sps:$4 sm:$0xff]   ;;  %v2018_v6 = vld [vmem:[%s2742_s6 + $0xcc] ss:$16 sps:$4 sm:$0xff]  }
  0xac   : > { %856 = vmatpush1.bf16.msra.mxu0 %v2014_v3  ;;  %899 = vmatpush1.bf16.msra.mxu1 %v2015_v4  ;;  %v2020_v7 = vld [vmem:[%s2742_s6 + $0xc0] ss:$16 sps:$4 sm:$0xff]   ;;  %v2021_v8 = vld [vmem:[%s2742_s6 + $0xc8] ss:$16 sps:$4 sm:$0xff]   ;;  %v2022_v9 = vld [vmem:[%s2742_s6 + $0xa4] ss:$16 sps:$4 sm:$0xff]  }
  0xad   : > { %857 = vmatprep.subr.bf16.mxu0 %v2016_v5  ;;  %900 = vmatprep.subr.bf16.mxu1 %v2018_v6  ;;  %v2024_v10 = vld [vmem:[%s2742_s6 + $0xac] ss:$16 sps:$4 sm:$0xff]   ;;  %v2026_v11 = vld [vmem:[%s2742_s6 + $0xa0] ss:$16 sps:$4 sm:$0xff]   ;;  %v2027_v12 = vld [vmem:[%s2742_s6 + $0xa8] ss:$16 sps:$4 sm:$0xff]  }
  0xae   : > { %v2028_v13 = vld [vmem:[%s2742_s6 + $0x84] ss:$16 sps:$4 sm:$0xff]   ;;  %v2030_v14 = vld [vmem:[%s2742_s6 + $0x8c] ss:$16 sps:$4 sm:$0xff]   ;;  %v2032_v15 = vld [vmem:[%s2742_s6 + $0x80] ss:$16 sps:$4 sm:$0xff]  }
  0xaf   : > { %v2033_v16 = vld [vmem:[%s2742_s6 + $0x88] ss:$16 sps:$4 sm:$0xff]   ;;  %v2034_v17 = vld [vmem:[%s2742_s6 + $0x64] ss:$16 sps:$4 sm:$0xff]   ;;  %v2036_v18 = vld [vmem:[%s2742_s6 + $0x6c] ss:$16 sps:$4 sm:$0xff]  }
  0xb0   : > { %858 = vmatpush1.bf16.msra.mxu0 %v2020_v7  ;;  %901 = vmatpush1.bf16.msra.mxu1 %v2021_v8  ;;  %v2038_v19 = vld [vmem:[%s2742_s6 + $0x60] ss:$16 sps:$4 sm:$0xff]   ;;  %v2039_v20 = vld [vmem:[%s2742_s6 + $0x68] ss:$16 sps:$4 sm:$0xff]   ;;  %v2040_v21 = vld [vmem:[%s2742_s6 + $0x44] ss:$16 sps:$4 sm:$0xff]  }
  0xb1   : > { %859 = vmatprep.subr.bf16.mxu0 %v2022_v9  ;;  %902 = vmatprep.subr.bf16.mxu1 %v2024_v10  ;;  %v2042_v22 = vld [vmem:[%s2742_s6 + $0x4c] ss:$16 sps:$4 sm:$0xff]   ;;  %v2044_v23 = vld [vmem:[%s2742_s6 + $0x40] ss:$16 sps:$4 sm:$0xff]   ;;  %v2045_v24 = vld [vmem:[%s2742_s6 + $0x48] ss:$16 sps:$4 sm:$0xff]  }
  0xb2   : > { %v2046_v25 = vld [vmem:[%s2742_s6 + $0x24] ss:$16 sps:$4 sm:$0xff]   ;;  %v2048_v26 = vld [vmem:[%s2742_s6 + $0x2c] ss:$16 sps:$4 sm:$0xff]   ;;  %v2050_v27 = vld [vmem:[%s2742_s6 + $0x20] ss:$16 sps:$4 sm:$0xff]  }
  0xb3   : > { %v2051_v28 = vld [vmem:[%s2742_s6 + $0x28] ss:$16 sps:$4 sm:$0xff]   ;;  %v2052_v29 = vld [vmem:[%s2742_s6 + $0x4] ss:$16 sps:$4 sm:$0xff]   ;;  %v2054_v30 = vld [vmem:[%s2742_s6 + $0xc] ss:$16 sps:$4 sm:$0xff]  }
  0xb4   : > { %860 = vmatpush1.bf16.msra.mxu0 %v2026_v11  ;;  %903 = vmatpush1.bf16.msra.mxu1 %v2027_v12  ;;  %v2056_v31 = vld [vmem:[%s2742_s6] ss:$16 sps:$4 sm:$0xff]   ;;  %v2057_v32 = vld [vmem:[%s2742_s6 + $0x8] ss:$16 sps:$4 sm:$0xff]   ;;  %v2058_v33 = vld [vmem:[%s2742_s6 + $0x1e4] ss:$16 sps:$4 sm:$0xff]  }
  0xb5   : > { %861 = vmatprep.subr.bf16.mxu0 %v2028_v13  ;;  %904 = vmatprep.subr.bf16.mxu1 %v2030_v14  ;;  %v2060_v34 = vld [vmem:[%s2742_s6 + $0x1ec] ss:$16 sps:$4 sm:$0xff]   ;;  %v2062_v35 = vld [vmem:[%s2742_s6 + $0x1e0] ss:$16 sps:$4 sm:$0xff]   ;;  %v2063_v36 = vld [vmem:[%s2742_s6 + $0x1e8] ss:$16 sps:$4 sm:$0xff]  }
  0xb6   : > { %v2064_v37 = vld [vmem:[%s2742_s6 + $0x1c4] ss:$16 sps:$4 sm:$0xff]   ;;  %v2066_v38 = vld [vmem:[%s2742_s6 + $0x1cc] ss:$16 sps:$4 sm:$0xff]   ;;  %v2068_v39 = vld [vmem:[%s2742_s6 + $0x1c0] ss:$16 sps:$4 sm:$0xff]  }
  0xb7   : > { %v2069_v40 = vld [vmem:[%s2742_s6 + $0x1c8] ss:$16 sps:$4 sm:$0xff]   ;;  %v2070_v41 = vld [vmem:[%s2742_s6 + $0x1a4] ss:$16 sps:$4 sm:$0xff]   ;;  %v2072_v42 = vld [vmem:[%s2742_s6 + $0x1ac] ss:$16 sps:$4 sm:$0xff]  }
  0xb8   : > { %862 = vmatpush1.bf16.msra.mxu0 %v2032_v15  ;;  %905 = vmatpush1.bf16.msra.mxu1 %v2033_v16  ;;  %v2074_v43 = vld [vmem:[%s2742_s6 + $0x1a0] ss:$16 sps:$4 sm:$0xff]   ;;  %v2075_v44 = vld [vmem:[%s2742_s6 + $0x1a8] ss:$16 sps:$4 sm:$0xff]   ;;  %v2076_v45 = vld [vmem:[%s2742_s6 + $0x184] ss:$16 sps:$4 sm:$0xff]  }
  0xb9   : > { %863 = vmatprep.subr.bf16.mxu0 %v2034_v17  ;;  %906 = vmatprep.subr.bf16.mxu1 %v2036_v18  ;;  %v2078_v46 = vld [vmem:[%s2742_s6 + $0x18c] ss:$16 sps:$4 sm:$0xff]   ;;  %v2080_v48 = vld [vmem:[%s2742_s6 + $0x180] ss:$16 sps:$4 sm:$0xff]   ;;  %v2081_v49 = vld [vmem:[%s2742_s6 + $0x188] ss:$16 sps:$4 sm:$0xff]  }
  0xba   : > { %v2108_v47 = vld [vmem:[%s370_s24 + $0x4] ss:$8 sps:$4 sm:$0xff]   ;;  %v2086_v52 = vld [vmem:[%s2742_s6 + $0x160] ss:$16 sps:$4 sm:$0xff]   ;;  %v2087_v53 = vld [vmem:[%s2742_s6 + $0x168] ss:$16 sps:$4 sm:$0xff]  }
  0xbb   : > { %v2082_v50 = vld [vmem:[%s2742_s6 + $0x164] ss:$16 sps:$4 sm:$0xff]   ;;  %v2084_v51 = vld [vmem:[%s2742_s6 + $0x16c] ss:$16 sps:$4 sm:$0xff]   ;;  %887 = vmatprep.mubr.bf16.mxu0 %v2108_v47  ;;  %930 = vmatprep.mubr.bf16.mxu1 %v2108_v47  ;;  %v2092_v56 = vld [vmem:[%s2742_s6 + $0x140] ss:$16 sps:$4 sm:$0xff]  }
  0xbc   : > { %864 = vmatpush1.bf16.msra.mxu0 %v2038_v19  ;;  %907 = vmatpush1.bf16.msra.mxu1 %v2039_v20  ;;  %v2088_v54 = vld [vmem:[%s2742_s6 + $0x144] ss:$16 sps:$4 sm:$0xff]   ;;  %v2090_v55 = vld [vmem:[%s2742_s6 + $0x14c] ss:$16 sps:$4 sm:$0xff]   ;;  %v2093_v57 = vld [vmem:[%s2742_s6 + $0x148] ss:$16 sps:$4 sm:$0xff]  }
  0xbd   : > { %865 = vmatprep.subr.bf16.mxu0 %v2040_v21  ;;  %908 = vmatprep.subr.bf16.mxu1 %v2042_v22  ;;  %v2094_v58 = vld [vmem:[%s2742_s6 + $0x124] ss:$16 sps:$4 sm:$0xff]   ;;  %v2096_v59 = vld [vmem:[%s2742_s6 + $0x12c] ss:$16 sps:$4 sm:$0xff]   ;;  %v2098_v60 = vld [vmem:[%s2742_s6 + $0x120] ss:$16 sps:$4 sm:$0xff]  }
  0xbe   : > { %v2099_v61 = vld [vmem:[%s2742_s6 + $0x128] ss:$16 sps:$4 sm:$0xff]   ;;  %v2100_v62 = vld [vmem:[%s2742_s6 + $0x104] ss:$16 sps:$4 sm:$0xff]   ;;  %v2102_v63 = vld [vmem:[%s2742_s6 + $0x10c] ss:$16 sps:$4 sm:$0xff]  }
  0xbf   : > { %v2104_v0 = vld [vmem:[%s2742_s6 + $0x100] ss:$16 sps:$4 sm:$0xff]   ;;  %v2105_v1 = vld [vmem:[%s2742_s6 + $0x108] ss:$16 sps:$4 sm:$0xff]   ;;  %s3032_s19 = sld [smem:[#allocation23_spill]] }
  0xc0   : > { %866 = vmatpush1.bf16.msra.mxu0 %v2044_v23  ;;  %909 = vmatpush1.bf16.msra.mxu1 %v2045_v24  ;;  %v2106_v2 = vld [vmem:[%s370_s24] ss:$8 sps:$4 sm:$0xff]  }
  0xc1   : > { %867 = vmatprep.subr.bf16.mxu0 %v2046_v25  ;;  %910 = vmatprep.subr.bf16.mxu1 %v2048_v26  ;;  %v451_v3 = vld [vmem:[#allocation2 + $0x30] sm:$0xff]  ;;  %v453_v4 = vld [vmem:[#allocation2 + $0x18] sm:$0xff]  ;;  %v452_v7 = vld [vmem:[#allocation2] sm:$0xff] }
  0xc2   : > { %v454_v8 = vld [vmem:[#allocation2 + $0x10] sm:$0xff]  ;;  %v455_v13 = vld [vmem:[#allocation2 + $0x8] sm:$0xff]  ;;  %v456_v19 = vld [vmem:[#allocation2 + $0x20] sm:$0xff] }
  0xc3   : > { %v457_v14 = vld [vmem:[#allocation2 + $0x28] sm:$0xff]  ;;  %v458_v20 = vld [vmem:[#allocation2 + $0x38] sm:$0xff] }
  0xc4   : > { %868 = vmatpush1.bf16.msra.mxu0 %v2050_v27  ;;  %911 = vmatpush1.bf16.msra.mxu1 %v2051_v28 }
  0xc5   : > { %869 = vmatprep.subr.bf16.mxu0 %v2052_v29  ;;  %912 = vmatprep.subr.bf16.mxu1 %v2054_v30  ;;  %p1679_p3 = scmp.ne.s32.totalorder %s3032_s19, 2 }
  0xc6   : > { %s3033_s0 = sld [smem:[#allocation34_spill]] (!%p1679_p3) }
  0xc7   : > { %s3034_s11 = sld [smem:[#allocation36_spill]] (!%p1679_p3) }
  0xc8   : > { %870 = vmatpush1.bf16.msra.mxu0 %v2056_v31  ;;  %913 = vmatpush1.bf16.msra.mxu1 %v2057_v32 }
  0xc9   : > { %871 = vmatprep.subr.bf16.mxu0 %v2058_v33  ;;  %914 = vmatprep.subr.bf16.mxu1 %v2060_v34 }
  0xcc   : > { %872 = vmatpush2.bf16.msra.mxu0 %v2062_v35  ;;  %915 = vmatpush2.bf16.msra.mxu1 %v2063_v36 }
  0xcd   : > { %873 = vmatprep.subr.bf16.mxu0 %v2064_v37  ;;  %916 = vmatprep.subr.bf16.mxu1 %v2066_v38 }
  0xd0   : > { %874 = vmatpush2.bf16.msra.mxu0 %v2068_v39  ;;  %917 = vmatpush2.bf16.msra.mxu1 %v2069_v40 }
  0xd1   : > { %875 = vmatprep.subr.bf16.mxu0 %v2070_v41  ;;  %918 = vmatprep.subr.bf16.mxu1 %v2072_v42 }
  0xd4   : > { %876 = vmatpush2.bf16.msra.mxu0 %v2074_v43  ;;  %919 = vmatpush2.bf16.msra.mxu1 %v2075_v44 }
  0xd5   : > { %877 = vmatprep.subr.bf16.mxu0 %v2076_v45  ;;  %920 = vmatprep.subr.bf16.mxu1 %v2078_v46 }
  0xd8   : > { %878 = vmatpush2.bf16.msra.mxu0 %v2080_v48  ;;  %921 = vmatpush2.bf16.msra.mxu1 %v2081_v49 }
  0xd9   : > { %879 = vmatprep.subr.bf16.mxu0 %v2082_v50  ;;  %922 = vmatprep.subr.bf16.mxu1 %v2084_v51 }
  0xdc   : > { %880 = vmatpush2.bf16.msra.mxu0 %v2086_v52  ;;  %923 = vmatpush2.bf16.msra.mxu1 %v2087_v53 }
  0xdd   : > { %881 = vmatprep.subr.bf16.mxu0 %v2088_v54  ;;  %924 = vmatprep.subr.bf16.mxu1 %v2090_v55 }
  0xe0   : > { %882 = vmatpush2.bf16.msra.mxu0 %v2092_v56  ;;  %925 = vmatpush2.bf16.msra.mxu1 %v2093_v57 }
  0xe1   : > { %883 = vmatprep.subr.bf16.mxu0 %v2094_v58  ;;  %926 = vmatprep.subr.bf16.mxu1 %v2096_v59 }
  0xe4   : > { %884 = vmatpush2.bf16.msra.mxu0 %v2098_v60  ;;  %927 = vmatpush2.bf16.msra.mxu1 %v2099_v61 }
  0xe5   : > { %885 = vmatprep.subr.bf16.mxu0 %v2100_v62  ;;  %928 = vmatprep.subr.bf16.mxu1 %v2102_v63 }
  0xe8   : > { %886 = vmatpush2.bf16.msra.mxu0 %v2104_v0  ;;  %929 = vmatpush2.bf16.msra.mxu1 %v2105_v1 }
  0xeb   : > { %888 = vmatmul.mubr.bf16.vlgmr.msra.gmra.mxu0 %v2106_v2  ;;  %931 = vmatmul.mubr.bf16.vlgmr.msra.gmra.mxu1 %v2106_v2 }
 0x1ab   : > { %v889_v5 = vpop.f32.mrf.mxu0  ;;  %v932_v6 = vpop.f32.mrf.mxu1 }
 0x1ac   : > { %v941_v9 = vadd.f32 %v889_v5, %v451_v3  ;;  %v943_v10 = vadd.f32 %v932_v6, %v453_v4 }
 0x1ad   : > { %v891_v11 = vpop.f32.mrf.mxu0  ;;  %v934_v12 = vpop.f32.mrf.mxu1 }
 0x1ae   : > { %949 = vst [vmem:[#allocation2 + $0x30] sm:$0xff] %v941_v9  ;;  %951 = vst [vmem:[#allocation2 + $0x18] sm:$0xff] %v943_v10  ;;  %v942_v15 = vadd.f32 %v891_v11, %v452_v7  ;;  %v944_v16 = vadd.f32 %v934_v12, %v454_v8 }
 0x1af   : > { %v893_v17 = vpop.f32.mrf.mxu0  ;;  %v936_v18 = vpop.f32.mrf.mxu1 }
 0x1b0   : > { %950 = vst [vmem:[#allocation2] sm:$0xff] %v942_v15  ;;  %952 = vst [vmem:[#allocation2 + $0x10] sm:$0xff] %v944_v16  ;;  %v945_v21 = vadd.f32 %v893_v17, %v455_v13  ;;  %v947_v22 = vadd.f32 %v936_v18, %v457_v14  ;;  %960 = sbr.rel (%p1679_p3) target bundleno = 1075 (0x433), region = 76 }
 0x1b1   : > { %v895_v23 = vpop.f32.mrf.mxu0  ;;  %v938_v24 = vpop.f32.mrf.mxu1 }
 0x1b2   : > { %953 = vst [vmem:[#allocation2 + $0x8] sm:$0xff] %v945_v21  ;;  %955 = vst [vmem:[#allocation2 + $0x28] sm:$0xff] %v947_v22  ;;  %v946_v25 = vadd.f32 %v895_v23, %v456_v19  ;;  %v948_v26 = vadd.f32 %v938_v24, %v458_v20 }
 0x1b4   : > { %954 = vst [vmem:[#allocation2 + $0x20] sm:$0xff] %v946_v25  ;;  %956 = vst [vmem:[#allocation2 + $0x38] sm:$0xff] %v948_v26 }
 0x1b5   : > { %v1038_v27 = vld [vmem:[#allocation9 + $0xf8] sm:$0xff]  ;;  %v1037_v31 = vld [vmem:[#allocation9 + $0xf0] sm:$0xff]  ;;  %v1036_v35 = vld [vmem:[#allocation9 + $0xe8] sm:$0xff]  ;;  %v971_v53 = vlaneseq }
 0x1b6   : > { %v1070_v28 = vld [vmem:[#allocation9 + $0x1f8] sm:$0xff]  ;;  %1703 = vmatprep.subr.mxu0 %v1038_v27  ;;  %v1069_v32 = vld [vmem:[#allocation9 + $0x1f0] sm:$0xff]  ;;  %v1068_v36 = vld [vmem:[#allocation9 + $0x1e8] sm:$0xff] }
 0x1b7   : > { %v1022_v29 = vld [vmem:[#allocation9 + $0x78] sm:$0xff]  ;;  %1741 = vmatprep.subr.mxu1 %v1070_v28  ;;  %v1021_v33 = vld [vmem:[#allocation9 + $0x70] sm:$0xff]  ;;  %v1020_v37 = vld [vmem:[#allocation9 + $0x68] sm:$0xff]  ;;  %v972_v62 = vshrl.u32 %v971_v53, 7 }
 0x1b8   : > { %v1054_v30 = vld [vmem:[#allocation9 + $0x178] sm:$0xff]  ;;  %1704 = vmatpush3.msra.mxu0 %v1022_v29  ;;  %v1053_v34 = vld [vmem:[#allocation9 + $0x170] sm:$0xff]  ;;  %v1052_v38 = vld [vmem:[#allocation9 + $0x168] sm:$0xff] }
 0x1b9   : > { %1742 = vmatpush3.msra.mxu1 %v1054_v30  ;;  %1705 = vmatprep.subr.mxu0 %v1037_v31  ;;  %v1035_v39 = vld [vmem:[#allocation9 + $0xe0] sm:$0xff]  ;;  %v1034_v43 = vld [vmem:[#allocation9 + $0xd8] sm:$0xff]  ;;  %v1033_v47 = vld [vmem:[#allocation9 + $0xd0] sm:$0xff]  ;;  %v977_v8 = vsub.s32 1, %v972_v62  ;;  %v985_v9 = vsub.s32 3, %v972_v62  ;;  %v973_v10 = vsub.s32 0, %v972_v62 }
 0x1ba   : > { %1743 = vmatprep.subr.mxu1 %v1069_v32  ;;  %1706 = vmatpush3.msra.mxu0 %v1021_v33  ;;  %v1067_v40 = vld [vmem:[#allocation9 + $0x1e0] sm:$0xff]  ;;  %v1066_v44 = vld [vmem:[#allocation9 + $0x1d8] sm:$0xff]  ;;  %v1065_v48 = vld [vmem:[#allocation9 + $0x1d0] sm:$0xff]  ;;  %v981_v14 = vsub.s32 2, %v972_v62 }
 0x1bb   : > { %1744 = vmatpush3.msra.mxu1 %v1053_v34  ;;  %1707 = vmatprep.subr.mxu0 %v1036_v35  ;;  %v1019_v41 = vld [vmem:[#allocation9 + $0x60] sm:$0xff]  ;;  %v1018_v45 = vld [vmem:[#allocation9 + $0x58] sm:$0xff]  ;;  %v1017_v49 = vld [vmem:[#allocation9 + $0x50] sm:$0xff] }
 0x1bc   : > { %1745 = vmatprep.subr.mxu1 %v1068_v36  ;;  %v1051_v42 = vld [vmem:[#allocation9 + $0x160] sm:$0xff]  ;;  %1708 = vmatpush3.msra.mxu0 %v1020_v37  ;;  %v1050_v46 = vld [vmem:[#allocation9 + $0x158] sm:$0xff]  ;;  %v1049_v50 = vld [vmem:[#allocation9 + $0x150] sm:$0xff] }
 0x1bd   : > { %1746 = vmatpush3.msra.mxu1 %v1052_v38  ;;  %1709 = vmatprep.subr.mxu0 %v1035_v39  ;;  %v1032_v51 = vld [vmem:[#allocation9 + $0xc8] sm:$0xff]  ;;  %v1031_v56 = vld [vmem:[#allocation9 + $0xc0] sm:$0xff]  ;;  %v1030_v60 = vld [vmem:[#allocation9 + $0xb8] sm:$0xff] }
 0x1be   : > { %1747 = vmatprep.subr.mxu1 %v1067_v40  ;;  %1710 = vmatpush3.msra.mxu0 %v1019_v41  ;;  %v1064_v52 = vld [vmem:[#allocation9 + $0x1c8] sm:$0xff]  ;;  %v1063_v57 = vld [vmem:[#allocation9 + $0x1c0] sm:$0xff]  ;;  %v1062_v61 = vld [vmem:[#allocation9 + $0x1b8] sm:$0xff] }
 0x1bf   : > { %1748 = vmatpush3.msra.mxu1 %v1051_v42  ;;  %1711 = vmatprep.subr.mxu0 %v1034_v43  ;;  %v1016_v54 = vld [vmem:[#allocation9 + $0x48] sm:$0xff]  ;;  %v1015_v58 = vld [vmem:[#allocation9 + $0x40] sm:$0xff]  ;;  %v1014_v63 = vld [vmem:[#allocation9 + $0x38] sm:$0xff] }
 0x1c0   : > { %1749 = vmatprep.subr.mxu1 %v1066_v44  ;;  %1712 = vmatpush3.msra.mxu0 %v1018_v45  ;;  %v1048_v55 = vld [vmem:[#allocation9 + $0x148] sm:$0xff]  ;;  %v1047_v59 = vld [vmem:[#allocation9 + $0x140] sm:$0xff]  ;;  %v1046_v0 = vld [vmem:[#allocation9 + $0x138] sm:$0xff] }
 0x1c1   : > { %1750 = vmatpush3.msra.mxu1 %v1050_v46  ;;  %1713 = vmatprep.subr.mxu0 %v1033_v47  ;;  %v1029_v1 = vld [vmem:[#allocation9 + $0xb0] sm:$0xff]  ;;  %v1028_v5 = vld [vmem:[#allocation9 + $0xa8] sm:$0xff]  ;;  %v1027_v12 = vld [vmem:[#allocation9 + $0xa0] sm:$0xff] }
 0x1c2   : > { %1751 = vmatprep.subr.mxu1 %v1065_v48  ;;  %1714 = vmatpush3.msra.mxu0 %v1017_v49  ;;  %v1061_v2 = vld [vmem:[#allocation9 + $0x1b0] sm:$0xff]  ;;  %v1060_v6 = vld [vmem:[#allocation9 + $0x1a8] sm:$0xff]  ;;  %v1059_v13 = vld [vmem:[#allocation9 + $0x1a0] sm:$0xff] }
 0x1c3   : > { %1752 = vmatpush3.msra.mxu1 %v1049_v50  ;;  %1715 = vmatprep.subr.mxu0 %v1032_v51  ;;  %v1013_v3 = vld [vmem:[#allocation9 + $0x30] sm:$0xff]  ;;  %v1012_v7 = vld [vmem:[#allocation9 + $0x28] sm:$0xff]  ;;  %v1011_v15 = vld [vmem:[#allocation9 + $0x20] sm:$0xff] }
 0x1c4   : > { %1753 = vmatprep.subr.mxu1 %v1064_v52  ;;  %1716 = vmatpush3.msra.mxu0 %v1016_v54  ;;  %v1045_v4 = vld [vmem:[#allocation9 + $0x130] sm:$0xff]  ;;  %v1044_v11 = vld [vmem:[#allocation9 + $0x128] sm:$0xff]  ;;  %v1043_v16 = vld [vmem:[#allocation9 + $0x120] sm:$0xff] }
 0x1c5   : > { %1754 = vmatpush3.msra.mxu1 %v1048_v55  ;;  %1717 = vmatprep.subr.mxu0 %v1031_v56  ;;  %v1026_v17 = vld [vmem:[#allocation9 + $0x98] sm:$0xff]  ;;  %v964_v24 = vld [vmem:[#allocation2 + $0x10] sm:$0xff]  ;;  %v965_v46 = vld [vmem:[#allocation2 + $0x8] sm:$0xff] }
 0x1c6   : > { %1755 = vmatprep.subr.mxu1 %v1063_v57  ;;  %1718 = vmatpush3.msra.mxu0 %v1015_v58  ;;  %v1058_v18 = vld [vmem:[#allocation9 + $0x198] sm:$0xff]  ;;  %v1025_v27 = vld [vmem:[#allocation9 + $0x90] sm:$0xff]  ;;  %v1024_v38 = vld [vmem:[#allocation9 + $0x88] sm:$0xff] }
 0x1c7   : > { %1756 = vmatpush3.msra.mxu1 %v1047_v59  ;;  %1719 = vmatprep.subr.mxu0 %v1030_v60  ;;  %v962_v19 = vld [vmem:[#allocation2] sm:$0xff]  ;;  %v961_v28 = vld [vmem:[#allocation2 + $0x30] sm:$0xff]  ;;  %v963_v29 = vld [vmem:[#allocation2 + $0x18] sm:$0xff] }
 0x1c8   : > { %1757 = vmatprep.subr.mxu1 %v1062_v61  ;;  %1720 = vmatpush3.msra.mxu0 %v1014_v63  ;;  %v969_v20 = vld [vmem:[#allocation8] sm:$0xf]  ;;  %v1057_v31 = vld [vmem:[#allocation9 + $0x190] sm:$0xff]  ;;  %v1056_v39 = vld [vmem:[#allocation9 + $0x188] sm:$0xff] }
 0x1c9   : > { %1758 = vmatpush3.msra.mxu1 %v1046_v0  ;;  %1721 = vmatprep.subr.mxu0 %v1029_v1  ;;  %v1010_v21 = vld [vmem:[#allocation9 + $0x18] sm:$0xff]  ;;  %v978_v23 = vrot.slane %v969_v20, %v977_v8  ;;  %v986_v25 = vrot.slane %v969_v20, %v985_v9  ;;  %v974_v26 = vrot.slane %v969_v20, %v973_v10  ;;  %v1009_v35 = vld [vmem:[#allocation9 + $0x10] sm:$0xff]  ;;  %v1008_v40 = vld [vmem:[#allocation9 + $0x8] sm:$0xff] }
 0x1ca   : > { %1759 = vmatprep.subr.mxu1 %v1061_v2  ;;  %1722 = vmatpush3.msra.mxu0 %v1013_v3  ;;  %v1042_v22 = vld [vmem:[#allocation9 + $0x118] sm:$0xff]  ;;  %v982_v30 = vrot.slane %v969_v20, %v981_v14  ;;  %v1041_v36 = vld [vmem:[#allocation9 + $0x110] sm:$0xff]  ;;  %v1040_v43 = vld [vmem:[#allocation9 + $0x108] sm:$0xff] }
 0x1cb   : > { %1760 = vmatpush3.msra.mxu1 %v1045_v4  ;;  %1723 = vmatprep.subr.mxu0 %v1028_v5  ;;  %v992_v32 = vadd.f32 %v978_v23, %v962_v19  ;;  %v966_v33 = vld [vmem:[#allocation2 + $0x20] sm:$0xff]  ;;  %v968_v34 = vld [vmem:[#allocation2 + $0x38] sm:$0xff]  ;;  %v994_v37 = vadd.f32 %v986_v25, %v964_v24  ;;  %v991_v41 = vadd.f32 %v974_v26, %v961_v28  ;;  %v967_v47 = vld [vmem:[#allocation2 + $0x28] sm:$0xff] }
 0x1cc   : > { %1761 = vmatprep.subr.mxu1 %v1060_v6  ;;  %1724 = vmatpush3.msra.mxu0 %v1012_v7  ;;  %v993_v42 = vadd.f32 %v982_v30, %v963_v29  ;;  %v996_v44 = vadd.f32 %v978_v23, %v966_v33  ;;  %v998_v45 = vadd.f32 %v986_v25, %v968_v34  ;;  %v1023_v48 = vld [vmem:[#allocation9 + $0x80] sm:$0xff]  ;;  %v1290_v63 = vld [vmem:[#allocation11 + $0x78] sm:$0xff]  ;;  %v1289_v0 = vld [vmem:[#allocation11 + $0x70] sm:$0xff] }
 0x1cd   : > { %1762 = vmatpush3.msra.mxu1 %v1044_v11  ;;  %1725 = vmatprep.subr.mxu0 %v1027_v12  ;;  %v1055_v49 = vld [vmem:[#allocation9 + $0x180] sm:$0xff]  ;;  %v1000_v50 = vmax.f32 %v992_v32, 0.0  ;;  %v1002_v52 = vmax.f32 %v994_v37, 0.0  ;;  %v999_v55 = vmax.f32 %v991_v41, 0.0  ;;  %v995_v57 = vadd.f32 %v974_v26, %v965_v46  ;;  %v1288_v1 = vld [vmem:[#allocation11 + $0x68] sm:$0xff]  ;;  %v1286_v3 = vld [vmem:[#allocation11 + $0x58] sm:$0xff] }
 0x1ce   : > { %1763 = vmatprep.subr.mxu1 %v1059_v13  ;;  %1726 = vmatpush3.msra.mxu0 %v1011_v15  ;;  %v1007_v51 = vld [vmem:[#allocation9] sm:$0xff]  ;;  %v1001_v56 = vmax.f32 %v993_v42, 0.0  ;;  %v997_v58 = vadd.f32 %v982_v30, %v967_v47  ;;  %v1004_v59 = vmax.f32 %v996_v44, 0.0  ;;  %v1006_v60 = vmax.f32 %v998_v45, 0.0  ;;  %v1285_v4 = vld [vmem:[#allocation11 + $0x50] sm:$0xff] }
 0x1cf   : > { %1764 = vmatpush3.msra.mxu1 %v1043_v16  ;;  %1727 = vmatprep.subr.mxu0 %v1026_v17  ;;  %v1039_v54 = vld [vmem:[#allocation9 + $0x100] sm:$0xff]  ;;  %v1003_v61 = vmax.f32 %v995_v57, 0.0  ;;  %v1680_v7 = vld [vmem:[%s3033_s0] ss:$0 sm:$0xff] }
 0x1d0   : > { %1765 = vmatprep.subr.mxu1 %v1058_v18  ;;  %1728 = vmatpush3.msra.mxu0 %v1010_v21  ;;  %v1005_v62 = vmax.f32 %v997_v58, 0.0  ;;  %v1287_v2 = vld [vmem:[#allocation11 + $0x60] sm:$0xff]  ;;  %v1282_v57 = vld [vmem:[#allocation11 + $0x38] sm:$0xff]  ;;  %v1281_v58 = vld [vmem:[#allocation11 + $0x30] sm:$0xff] }
 0x1d1   : > { %1766 = vmatpush3.msra.mxu1 %v1042_v22  ;;  %1729 = vmatprep.subr.mxu0 %v1025_v27 }
 0x1d2   : > { %1767 = vmatprep.subr.mxu1 %v1057_v31  ;;  %1730 = vmatpush3.msra.mxu0 %v1009_v35 }
 0x1d3   : > { %1768 = vmatpush3.msra.mxu1 %v1041_v36  ;;  %1731 = vmatprep.subr.mxu0 %v1024_v38 }
 0x1d4   : > { %1769 = vmatprep.subr.mxu1 %v1056_v39  ;;  %1732 = vmatpush3.msra.mxu0 %v1008_v40  ;;  %v1261_v39 = vand.u32 127, %v971_v53 }
 0x1d5   : > { %1770 = vmatpush3.msra.mxu1 %v1040_v43  ;;  %1733 = vmatprep.subr.mxu0 %v1023_v48 }
 0x1d6   : > { %1771 = vmatprep.subr.mxu1 %v1055_v49  ;;  %1734 = vmatpush3.msra.mxu0 %v1007_v51  ;;  %vm1262_vm1 = vcmp.lt.s32.totalorder %v1261_v39, 20 }
 0x1d7   : > { %1142 = vmatprep.mubr.f32.mxu0 %v1000_v50  ;;  %1772 = vmatpush3.msra.mxu1 %v1039_v54 }
 0x1d8   : > { %1217 = vmatprep.mubr.f32.mxu1 %v1002_v52  ;;  %1143 = vmatmul.mubr.f32.vlgmr.msra.gmra.mxu0 %v999_v55  ;;  %v1284_v55 = vld [vmem:[#allocation11 + $0x48] sm:$0xff] }
 0x1d9   : > { %1218 = vmatmul.mubr.f32.vlgmr.msra.gmra.mxu1 %v1001_v56  ;;  %1147 = vmatprep.mubr.f32.mxu0 %v1004_v59  ;;  %v1283_v56 = vld [vmem:[#allocation11 + $0x40] sm:$0xff]  ;;  %v1280_v59 = vld [vmem:[#allocation11 + $0x28] sm:$0xff] }
 0x1da   : > { %1222 = vmatprep.mubr.f32.mxu1 %v1006_v60  ;;  %1797 = vmatprep.subr.mxu0 %v1290_v63  ;;  %v1279_v60 = vld [vmem:[#allocation11 + $0x20] sm:$0xff] }
 0x1db   : > { %1798 = vmatpush3.msra.mxu0 %v1290_v63  ;;  %v1276_v63 = vld [vmem:[#allocation11 + $0x8] sm:$0xff] }
 0x1dc   : > { %1148 = vmatmul.mubr.f32.gmra.mxu0 %v1003_v61  ;;  %1799 = vmatprep.subr.mxu0 %v1289_v0  ;;  %v1278_v61 = vld [vmem:[#allocation11 + $0x18] sm:$0xff] }
 0x1dd   : > { %1223 = vmatmul.mubr.f32.gmra.mxu1 %v1005_v62  ;;  %1800 = vmatpush3.msra.mxu0 %v1289_v0  ;;  %v1277_v62 = vld [vmem:[#allocation11 + $0x10] sm:$0xff]  ;;  %v1275_v0 = vld [vmem:[#allocation11] sm:$0xff] }
 0x1de   : > { %1801 = vmatprep.subr.mxu0 %v1288_v1 }
 0x1df   : > { %1802 = vmatpush3.msra.mxu0 %v1288_v1 }
 0x1e0   : > { %1803 = vmatprep.subr.mxu0 %v1287_v2 }
 0x1e1   : > { %1804 = vmatpush3.msra.mxu0 %v1287_v2 }
 0x1e2   : > { %1805 = vmatprep.subr.mxu0 %v1286_v3 }
 0x1e3   : > { %1806 = vmatpush3.msra.mxu0 %v1286_v3 }
 0x1e4   : > { %1807 = vmatprep.subr.mxu0 %v1285_v4 }
 0x1e5   : > { %1808 = vmatpush3.msra.mxu0 %v1285_v4 }
 0x1e6   : > { %1809 = vmatprep.subr.mxu0 %v1284_v55 }
 0x1e7   : > { %1810 = vmatpush3.msra.mxu0 %v1284_v55 }
 0x1e8   : > { %1811 = vmatprep.subr.mxu0 %v1283_v56 }
 0x1e9   : > { %1812 = vmatpush3.msra.mxu0 %v1283_v56 }
 0x1ea   : > { %1813 = vmatprep.subr.mxu0 %v1282_v57 }
 0x1eb   : > { %1814 = vmatpush3.msra.mxu0 %v1282_v57 }
 0x1ec   : > { %1815 = vmatprep.subr.mxu0 %v1281_v58 }
 0x1ed   : > { %1816 = vmatpush3.msra.mxu0 %v1281_v58 }
 0x1ee   : > { %1817 = vmatprep.subr.mxu0 %v1280_v59 }
 0x1ef   : > { %1818 = vmatpush3.msra.mxu0 %v1280_v59 }
 0x1f0   : > { %1819 = vmatprep.subr.mxu0 %v1279_v60 }
 0x1f1   : > { %1820 = vmatpush3.msra.mxu0 %v1279_v60 }
 0x1f2   : > { %1821 = vmatprep.subr.mxu0 %v1278_v61 }
 0x1f3   : > { %1822 = vmatpush3.msra.mxu0 %v1278_v61 }
 0x1f4   : > { %1823 = vmatprep.subr.mxu0 %v1277_v62 }
 0x1f5   : > { %1824 = vmatpush3.msra.mxu0 %v1277_v62 }
 0x1f6   : > { %1825 = vmatprep.subr.mxu0 %v1276_v63 }
 0x1f7   : > { %1826 = vmatpush3.msra.mxu0 %v1276_v63 }
 0x1f8   : > { %1827 = vmatprep.subr.mxu0 %v1275_v0 }
 0x1f9   : > { %1828 = vmatpush3.msra.mxu0 %v1275_v0 }
 0x298   : > { %v1735_v5 = vpop.f32.mrf.mxu0 }
 0x299   : > { %v1773_v6 = vpop.f32.mrf.mxu1 }
 0x29a   : > { %v1736_v8 = vpop.f32.mrf.mxu0 }
 0x29b   : > { %v1774_v9 = vpop.f32.mrf.mxu1  ;;  %v1737_v10 = vadd.f32 %v1736_v8, %v1735_v5  ;;  %v1681_v8 = vld [vmem:[%s3034_s11] ss:$0 sm:$0xff] }
 0x29c   : > { %v1738_v11 = vpop.f32.mrf.mxu0  ;;  %v1775_v14 = vadd.f32 %v1774_v9, %v1773_v6 }
 0x29d   : > { %v1776_v12 = vpop.f32.mrf.mxu1  ;;  %v1145_v13 = vadd.f32 %v1737_v10, %v1680_v7 }
 0x29e   : > { %v1739_v15 = vpop.f32.mrf.mxu0 }
 0x29f   : > { %v1777_v16 = vpop.f32.mrf.mxu1  ;;  %v1220_v17 = vadd.f32 %v1775_v14, %v1145_v13  ;;  %v1740_v18 = vadd.f32 %v1739_v15, %v1738_v11 }
 0x2a0   : > { %v1778_v21 = vadd.f32 %v1777_v16, %v1776_v12 }
 0x2a1   : > { %v1230_v19 = vand.u32 2147483647, %v1220_v17  ;;  %v1150_v20 = vadd.f32 %v1740_v18, %v1680_v7  ;;  %v1228_v41 = vmax.f32 %v1220_v17, 0.0 }
 0x2a3   : > { %v1232_v22 = vsub.f32 0.0, %v1230_v19  ;;  %v1225_v23 = vadd.f32 %v1778_v21, %v1150_v20 }
 0x2a5   : > { %v1234_v24 = vmul.f32 1.442695, %v1232_v22  ;;  %v1231_v25 = vand.u32 2147483647, %v1225_v23  ;;  %v1229_v48 = vmax.f32 %v1225_v23, 0.0 }
 0x2a7   : > { %2109 = vpow2.f32 %v1234_v24  ;;  %v1233_v26 = vsub.f32 0.0, %v1231_v25 }
 0x2a9   : > { %v1236_v27 = vmul.f32 1.442695, %v1233_v26 }
 0x2ab   : > { %2111 = vpow2.f32 %v1236_v27 }
 0x2b4   : > { %v2110_v28 = vpop.eup %2109 }
 0x2b5   : > { %v1238_v29 = vadd.f32 1.0, %v2110_v28  ;;  %v1241_v32 = vmul.f32 -0.5, %v2110_v28  ;;  %v1244_v35 = vand.u32 2147483647, %v2110_v28 }
 0x2b7   : > { %2113 = vlog2.f32 %v1238_v29  ;;  %v1242_v33 = vadd.f32 1.0, %v1241_v32  ;;  %vm1245_vm0 = vcmp.lt.f32.partialorder %v1244_v35, 0.0004427343 }
 0x2b8   : > { %v2112_v30 = vpop.eup %2111 }
 0x2b9   : > { %v1247_v31 = vadd.f32 1.0, %v2112_v30  ;;  %v1250_v34 = vmul.f32 -0.5, %v2112_v30  ;;  %v1243_v38 = vmul.f32 %v2110_v28, %v1242_v33  ;;  %v1253_v42 = vand.u32 2147483647, %v2112_v30 }
 0x2bb   : > { %2115 = vlog2.f32 %v1247_v31  ;;  %v1251_v40 = vadd.f32 1.0, %v1250_v34  ;;  %vm1254_vm2 = vcmp.lt.f32.partialorder %v1253_v42, 0.0004427343 }
 0x2bd   : > { %v1252_v47 = vmul.f32 %v2112_v30, %v1251_v40 }
 0x2c4   : > { %v2114_v36 = vpop.eup %2113 }
 0x2c5   : > { %v1240_v37 = vmul.f32 0.6931472, %v2114_v36 }
 0x2c7   : > { %v1246_v43 = vsel %vm1245_vm0, %v1243_v38, %v1240_v37 }
 0x2c8   : > { %v2116_v44 = vpop.eup %2115  ;;  %v1256_v45 = vadd.f32 %v1246_v43, %v1228_v41 }
 0x2c9   : > { %v1249_v46 = vmul.f32 0.6931472, %v2116_v44 }
 0x2ca   : > { %v1258_v49 = vmax.f32 %v1256_v45, 1e-05 }
 0x2cb   : > { %v1255_v50 = vsel %vm1254_vm2, %v1252_v47, %v1249_v46 }
 0x2cc   : > { %v1263_v51 = vsel %vm1262_vm1, %v1258_v49, 0.0  ;;  %v1257_v52 = vadd.f32 %v1255_v50, %v1229_v48 }
 0x2cd   : > { %1267 = vadd.xlane.f32.xlu0 %v1263_v51  ;;  %1265 = vst [vmem:[%s2761_s5] sm:$0xff] %v1263_v51 }
 0x2ce   : > { %v1259_v53 = vmax.f32 %v1257_v52, 1e-05 }
 0x2d0   : > { %v1264_v54 = vsel %vm1262_vm1, %v1259_v53, 0.0 }
 0x2d1   : > { %1266 = vst [vmem:[%s2761_s5 + $0x8] sm:$0xff] %v1264_v54  ;;  %1269 = vadd.xlane.f32.xlu0 %v1264_v54 }
 0x356   : > { %v1268_v1 = vpop.xlane.xlu0 %1267 }
 0x357   : > { %2117 = vrcp.f32 %v1268_v1 }
 0x35a   : > { %v1270_v2 = vpop.xlane.xlu0 %1269 }
 0x35b   : > { %2119 = vrcp.f32 %v1270_v2 }
 0x364   : > { %v2118_v3 = vpop.eup %2117 }
 0x365   : > { %v1273_v4 = vmul.f32 %v2118_v3, %v1263_v51 }
 0x367   : > { %1829 = vmatprep.mubr.f32.mxu0 %v1273_v4 }
 0x368   : > { %v2120_v5 = vpop.eup %2119 }
 0x369   : > { %v1274_v6 = vmul.f32 %v2120_v5, %v1264_v54 }
 0x36b   : > { %1830 = vmatmul.mubr.f32.vlgmr.msra.gmra.mxu0 %v1274_v6 }
 0x42b   : > { %v1831_v7 = vpop.f32.mrf.mxu0 }
 0x42c   : > { %v1370_v10 = vadd.f32 %v1831_v7, %v1681_v8 }
 0x42d   : > { %v1364_v9 = vpop.f32.mrf.mxu0 }
 0x42e   : > { %v1365_v11 = vadd.f32 %v1681_v8, %v1364_v9 }
 0x430   : > { %v1701_v12 = vpack.c.bf16 %v1370_v10, %v1365_v11 }
 0x432   : > { %1702 = vst [vmem:[%s2763_s20] sm:$0xff] %v1701_v12  }
 0x433 PF: > { %s3035_s14 = sld [smem:[#allocation24_spill]]  ;;  %s1402_s22 = sshll.u32 %s2761_s5, 4  ;;  %s2853_s22 = int_to_ptr.vmem [resolvable:$true] %s1402_s22 }
 0x434   : > { %s3036_s24 = sld [smem:[#allocation26_spill]]  ;;  %s1384_s4 = scalar_lea.sflag [#allocation5], %s2757_s8 }
 0x435   : > { %s3037_s2 = sld [smem:[#allocation37_spill]]  ;;  %s2255_s23 = scalar_lea.vmem %s2853_s22, 256 }
 0x436   : > { %p2256_p11 = scmp.ne.s32.totalorder %s2853_s22, %s2255_s23  ;;  %s2454_s3 = smov [#allocation12]  }
 0x437   : > { %s2259_s19 = sshll.u32 %s2454_s3, 4  ;;  %s2260_s19 = int_to_ptr.vmem [resolvable:$false] %s2259_s19 }
 0x438   : > { %s2261_s15 = scalar_lea.vmem %s2260_s19, 512  ;;  %p2262_p7 = scmp.lt.s32.totalorder %s2853_s22, %s2260_s19 }
 0x439   : > { %s1696_s17 = sshll.u32 %s3035_s14, 8  ;;  %p2263_p10 = scmp.lt.s32.totalorder %s2261_s15, %s2255_s23 }
 0x43a   : > { %p3038_p13 = scmp.ne.s32.totalorder %s3036_s24, 0 }
 0x43b   : > { %s2850_s6 = scalar_lea.hbm %s3037_s2, %s1696_s17  ;;  %p2264_p12 = por %p2263_p10, %p2262_p7 }
 0x43c   : > { %p2257_p8 = pnand %p2256_p11, %p3038_p13 }
 0x43e   : > { %p2258_p4 = pneg %p2257_p8 }
 0x440   : > { %p2265_p6 = pnand %p2264_p12, %p2258_p4 }
 0x442   : > { %2268 = shalt.err (!%p2265_p6)
}
 0x443   : > { %s2269_s5 = scalar_lea.hbm %s2850_s6, 256  ;;  %s2273_s21 = scalar_lea.hbm %s3037_s2, 768 }
 0x444   : > { %p2270_p1 = scmp.ne.s32.totalorder %s2850_s6, %s2269_s5  ;;  %p2274_p0 = scmp.lt.s32.totalorder %s2850_s6, %s3037_s2 }
 0x445   : > { %p2275_p2 = scmp.lt.s32.totalorder %s2273_s21, %s2269_s5 }
 0x446   : > { %p2271_p9 = pnand %p2270_p1, %p3038_p13 }
 0x447   : > { %p2276_p3 = por %p2275_p2, %p2274_p0 }
 0x448   : > { %p2272_p5 = pneg %p2271_p9 }
 0x44a   : > { %p2277_p11 = pnand %p2276_p3, %p2272_p5 }
 0x44c   : > { %2280 = shalt.err (!%p2277_p11)
}
 0x44d   : > { %s2455_s17 = smov 128   ;;  %s2456_s30 = smov 8  }
 0x44e   : > { %1849 = dma.vmem_to_hbm [thread:$0]  (%p3038_p13), %s2853_s22, 256, %s2850_s6, %s1384_s4, %s2455_s17, %s2455_s17, %s2456_s30  }
 0x44f   : > { %s1697_s26 = sshll.u32 %s3035_s14, 7  ;;  %s1418_s23 = sshll.u32 %s2763_s20, 4  ;;  %s2885_s23 = int_to_ptr.vmem [resolvable:$true] %s1418_s23 }
 0x450   : > { %s3039_s15 = sld [smem:[#allocation38_spill]]  ;;  %s1389_s0 = scalar_lea.sflag [#allocation14], %s2757_s8 }
 0x451   : > { %s2281_s21 = scalar_lea.vmem %s2885_s23, 128  ;;  %s2457_s25 = smov [#allocation13]  }
 0x452   : > { %p2282_p8 = scmp.ne.s32.totalorder %s2885_s23, %s2281_s21  ;;  %s2285_s6 = sshll.u32 %s2457_s25, 4  ;;  %s2286_s6 = int_to_ptr.vmem [resolvable:$false] %s2285_s6 }
 0x453   : > { %s2287_s20 = scalar_lea.vmem %s2286_s6, 256  ;;  %p2288_p10 = scmp.lt.s32.totalorder %s2885_s23, %s2286_s6 }
 0x454   : > { %p2283_p4 = pnand %p2282_p8, %p3038_p13  ;;  %p2289_p12 = scmp.lt.s32.totalorder %s2287_s20, %s2281_s21 }
 0x456   : > { %s3040_s5 = smov %s3039_s15  ;;  %s2883_s28 = scalar_lea.hbm %s3039_s15, %s1697_s26 }
 0x457   : > { %p2284_p7 = pneg %p2283_p4  ;;  %p2290_p6 = por %p2289_p12, %p2288_p10 }
 0x459   : > { %p2291_p1 = pnand %p2290_p6, %p2284_p7 }
 0x45b   : > { %2294 = shalt.err (!%p2291_p1)
}
 0x45c   : > { %s2295_s14 = scalar_lea.hbm %s2883_s28, 128  ;;  %s2299_s11 = scalar_lea.hbm %s3040_s5, 384 }
 0x45d   : > { %p2296_p9 = scmp.ne.s32.totalorder %s2883_s28, %s2295_s14  ;;  %p2300_p2 = scmp.lt.s32.totalorder %s2883_s28, %s3040_s5 }
 0x45e   : > { %p2301_p3 = scmp.lt.s32.totalorder %s2299_s11, %s2295_s14 }
 0x45f   : > { %p2297_p5 = pnand %p2296_p9, %p3038_p13 }
 0x460   : > { %p2302_p11 = por %p2301_p3, %p2300_p2 }
 0x461   : > { %p2298_p0 = pneg %p2297_p5 }
 0x463   : > { %p2303_p8 = pnand %p2302_p11, %p2298_p0 }
 0x465   : > { %2306 = shalt.err (!%p2303_p8)
}
 0x466   : > { %s2458_s26 = smov 64   ;;  %s2459_s3 = smov 4  }
 0x467   : > { %1850 = dma.vmem_to_hbm [thread:$0]  (%p3038_p13), %s2885_s23, 128, %s2883_s28, %s1389_s0, %s2458_s26, %s2458_s26, %s2459_s3  }
 0x468 PF: > { %s3041_s19 = sld [smem:[#allocation21_spill]]  ;;  %p1884_p4 = scmp.ge.s32.totalorder %s2441_s18, 2 }
 0x469   : > { %s3042_s15 = sld [smem:[#allocation27_spill]] }
 0x46e   : > { %s1433_s21 = sand.u32 1, %s3041_s19  }
 0x46f   : > { %p3043_p7 = scmp.ne.s32.totalorder %s3042_s15, 0  ;;  %s1434_s25 = scalar_lea.sflag [#allocation5], %s1433_s21 }
 0x471   : > { %p1871_p10 = pnand %p1884_p4, %p3043_p7 }
 0x473   : > { %p1872_p12 = pneg %p1871_p10 }
 0x475   : > { %2380 = dma.done.wait (%p1872_p12), %s1434_s25, 256  }
 0x476   : > { %2382 = vsyncadd (%p1872_p12), %s1434_s25, 4294967040  ;;  %s1443_s6 = scalar_lea.sflag [#allocation14], %s1433_s21 }
 0x477   : > { %2384 = dma.done.wait (%p1872_p12), %s1443_s6, 128  }
 0x478   : > { %2386 = vsyncadd (%p1872_p12), %s1443_s6, 4294967168  ;;  %s32_s18 = sadd.s32 1, %s2441_s18   ;;  %s3045_s24 = sld [smem:[#allocation22_spill]] }
 0x479   : > { %p2915_p6 = scmp.ge.s32.totalorder %s32_s18, 11   ;;  %s3046_s23 = sld [smem:[#allocation30_spill]] }
 0x47a   : > { %s3047_s0 = smov %s2684_s27  ;;  %s3048_s15 = sld [smem:[#allocation25_spill]] }
 0x47b   : > { %s3049_s20 = sld [smem:[#allocation28_spill]]  ;;  %s3052_s28 = smov %s2397_s29 }
 0x47c   : > { %s3050_s17 = sld [smem:[#allocation29_spill]]  ;;  %s3054_s30 = smov %s2405_s9 }
 0x47d   : > { %s3055_s9 = smov %s2409_s10  ;;  %s3056_s10 = smov %s2711_s7 }
 0x47e   : > { %s3051_s27 = smov %s3045_s24  ;;  %s3057_s11 = smov %s2417_s12 }
 0x47f   : > { %s3053_s29 = smov %s3046_s23  ;;  %s3058_s12 = smov %s2421_s13 }
 0x480   : > { %s3059_s13 = smov %s3047_s0  ;;  %s3060_s14 = smov %s2433_s16 }
 0x481   : > { %s3061_s16 = smov %s3049_s20  ;;  %31 = sbr.rel (!%p2915_p6) target bundleno = 24 (0x18), region = 143 }
 0x486   :  { %1448 = vsyncpa [#allocation4], 1 }
 0x487   :  { %1450 = vsyncpa [#allocation4 + $0x1], 1 }
 0x488   :  { %1451 = vsyncpa [#allocation7], 1 }
 0x489   :  { %1453 = vsyncpa [#allocation7 + $0x1], 1 }
 0x48a   :  { %1454 = vsyncpa [#allocation10], 1 }
 0x48b   :  { %1455 = vsyncpa [#allocation5], 1 }
 0x48c   :  { %1457 = vsyncpa [#allocation5 + $0x1], 1 }
 0x48d   :  { %1458 = vsyncpa [#allocation14], 1 }
 0x48e   :  { %1460 = vsyncpa [#allocation14 + $0x1], 1 }

</bundles_post_ra>
